<compile_context>
chip_gen: v5e
topology: v5e:2x2
jax: 0.10.0
libtpu: 0.0.40
codegen_flags: <defaults>
</compile_context>

<pallas_src>
import jax
import jax.numpy as jnp
from jax import lax
from jax.experimental import pallas as pl
from jax.experimental.pallas import tpu as pltpu

# ---------------------------------------------------------------------------
# Hyper-parameters mirroring CombinedValueEncoder.__init__
# ---------------------------------------------------------------------------
SHARED_FEATURE_SIZE = 18            # SHARED_FEATURE_SIZE
NUM_TASKS = 8                       # num_tasks == sequence length of the encoder
EMB_DIM = 8                         # (obs_dim - 18) / num_tasks
NUM_HEADS = 2                       # kwargs['num_heads']
HEAD_DIM = EMB_DIM // NUM_HEADS
HIDDEN_DIM = 32                     # hidden_dim (encoder FFN and shared MLP)
NUM_MODULES = 2                     # kwargs['num_modules']
OBS_DIM = NUM_TASKS * EMB_DIM + SHARED_FEATURE_SIZE   # 82
BATCH = 16                          # demo batch; wrapper handles any batch size
LN_EPS = 1e-5

SUB_LANES = 128                             # attention sub-slab width (one MXU-native slab)
assert SUB_LANES % NUM_TASKS == 0
BASE_CHUNK_B = SUB_LANES // NUM_TASKS       # 16 samples -> 128 lanes (fills v5e MXU)
WIDE_CHUNK_B = 2 * BASE_CHUNK_B             # 32 samples -> 256 lanes (fills v6e/v7x MXU)

# Row offsets inside the packed per-module parameter slabs.
_W_QKV = (0, 3 * EMB_DIM)                               # (24, 8)
_W_O = (_W_QKV[1], _W_QKV[1] + EMB_DIM)                 # (8, 8)
_W_F1 = (_W_O[1], _W_O[1] + HIDDEN_DIM)                 # (32, 8)   -> 64 rows total
_B_QKV = (0, 3 * EMB_DIM)
_B_O = (_B_QKV[1], _B_QKV[1] + EMB_DIM)
_LN_W = (_B_O[1], _B_O[1] + EMB_DIM)
_LN_B = (_LN_W[1], _LN_W[1] + EMB_DIM)
_B_F1 = (_LN_B[1], _LN_B[1] + HIDDEN_DIM)
_B_F2 = (_B_F1[1], _B_F1[1] + EMB_DIM)                  # -> 88 rows total


# ---------------------------------------------------------------------------
# Small helpers (bf16 MXU inputs, f32 accumulation)
# ---------------------------------------------------------------------------
def _mm(a, b):
    """a @ b (standard contraction)."""
    return jnp.dot(a.astype(jnp.bfloat16), b.astype(jnp.bfloat16),
                   preferred_element_type=jnp.float32)


def _mm_rt(a, b):
    """a @ b.T (rhs-transposed contraction)."""
    return lax.dot_general(a.astype(jnp.bfloat16), b.astype(jnp.bfloat16),
                           (((1,), (1,)), ((), ())),
                           preferred_element_type=jnp.float32)


def _layer_norm_t(x, w, b):
    """LayerNorm over the feature (sublane) axis of an (E, N) slab; w, b are (E, 1)."""
    mu = jnp.mean(x, axis=0, keepdims=True)
    var = jnp.mean(jnp.square(x - mu), axis=0, keepdims=True)
    return (x - mu) * lax.rsqrt(var + LN_EPS) * w + b


# ---------------------------------------------------------------------------
# Pallas kernel: one chunk of CHUNK_B samples (128 or 256 lane-dense columns) per grid step
# ---------------------------------------------------------------------------
def combined_value_encoder_kernel(task_ref, shared_ref,
                                  mask_ref, gsel_ref, wtask_ref,
                                  wma_ref, wf2_ref, vec_ref,
                                  wl1_ref, wl2_ref, bl_ref, wsb_ref,
                                  out_ref):
    n = task_ref.shape[1]                                   # CHUNK_B * NUM_TASKS (128 or 256)
    nsub = n // SUB_LANES                                   # attention sub-slabs per chunk
    x = task_ref[...]                                       # (E, N) f32, feature-major
    mask = mask_ref[...]                                    # (128, 128) f32 block-diag additive

    scale = 1.0 / (HEAD_DIM ** 0.5)

    for m in range(NUM_MODULES):                            # static unroll over modules
        wma = wma_ref[m]                                    # (64, 8) bf16
        vec = vec_ref[m]                                    # (88, 1) f32
        w_qkv = wma[_W_QKV[0]:_W_QKV[1]]
        w_o = wma[_W_O[0]:_W_O[1]]
        w_f1 = wma[_W_F1[0]:_W_F1[1]]
        w_f2 = wf2_ref[m]                                   # (8, 32) bf16
        b_qkv = vec[_B_QKV[0]:_B_QKV[1]]
        b_o = vec[_B_O[0]:_B_O[1]]
        ln_w = vec[_LN_W[0]:_LN_W[1]]
        ln_b = vec[_LN_B[0]:_LN_B[1]]
        b_f1 = vec[_B_F1[0]:_B_F1[1]]
        b_f2 = vec[_B_F2[0]:_B_F2[1]]

        # Fused Q/K/V projection for the whole chunk: (24, 8) @ (8, N).
        qkv = _mm(w_qkv, x) + b_qkv                         # (3E, N) f32
        # One XLU transpose of scaled Q per module (replaces the old eye matmul on the MXU).
        q_rows = jnp.transpose(qkv[:EMB_DIM] * scale)       # (N, E) f32, row-major queries

        o_subs = []
        for j in range(nsub):                               # static unroll over 128-lane slabs
            sl = slice(j * SUB_LANES, (j + 1) * SUB_LANES)
            head_outs = []
            for h in range(NUM_HEADS):                      # static unroll over heads
                lo, hi = h * HEAD_DIM, (h + 1) * HEAD_DIM
                k_h = qkv[EMB_DIM + lo:EMB_DIM + hi, sl]    # (hd, 128)
                v_h = qkv[2 * EMB_DIM + lo:2 * EMB_DIM + hi, sl]
                # Block-diagonal-masked (128, 128) score matmul (each sample only sees its
                # own NUM_TASKS columns).  Mask added post-matmul in f32.
                s = _mm(q_rows[sl, lo:hi], k_h) + mask      # (128, 128) f32
                s = s - jnp.max(s, axis=-1, keepdims=True)
                p = jnp.exp(s)
                # EUP approx reciprocal instead of a full-tile f32 divide on the VPU.
                p = p * pl.reciprocal(jnp.sum(p, axis=-1, keepdims=True), approx=True)
                head_outs.append(_mm_rt(v_h, p))            # (hd, 128) == (P @ V)^T
            o_subs.append(jnp.concatenate(head_outs, axis=0))   # (E, 128)
        o_all = o_subs[0] if nsub == 1 else jnp.concatenate(o_subs, axis=1)   # (E, N)

        attn = _mm(w_o, o_all) + b_o                        # fused out-projection
        x = _layer_norm_t(x + attn, ln_w, ln_b)

        h1 = jnp.maximum(_mm(w_f1, x) + b_f1, 0.0)          # (HID, N)
        h2 = _mm(w_f2, h1) + b_f2                           # (E, N)
        x = _layer_norm_t(x + h2, ln_w, ln_b)               # same LayerNorm reused (as in torch)

    # Shared-feature MLP: Linear(18,32) -> ReLU -> Linear(32,18) -> ReLU (tiny, row-major).
    s_in = shared_ref[...]                                  # (CHUNK_B, 18) f32
    b_l1 = bl_ref[:, :HIDDEN_DIM]                           # (1, 32)
    b_l2 = bl_ref[:, HIDDEN_DIM:HIDDEN_DIM + SHARED_FEATURE_SIZE]    # (1, 18)
    s1 = jnp.maximum(_mm(s_in, wl1_ref[...]) + b_l1, 0.0)   # (CHUNK_B, 32)
    s2 = jnp.maximum(_mm(s1, wl2_ref[...]) + b_l2, 0.0)     # (CHUNK_B, 18)

    # Output layer on concat([flatten(x_b), s2_b]) for every sample of the chunk (exact f32).
    w_sh = wsb_ref[:, :SHARED_FEATURE_SIZE]                 # (1, 18)
    out_b = wsb_ref[:, SHARED_FEATURE_SIZE:SHARED_FEATURE_SIZE + 1]  # (1, 1)
    out_shared = jnp.sum(s2 * w_sh, axis=1, keepdims=True)  # (CHUNK_B, 1)

    r = jnp.sum(x * wtask_ref[...], axis=0, keepdims=True)  # (1, N): per-column partial dot
    # gsel is a host-precomputed (CHUNK_B, N) 0/1 selection matrix (exact f32 group reduce).
    out_task = jnp.sum(gsel_ref[...] * r, axis=1, keepdims=True)     # (CHUNK_B, 1)

    out_ref[...] = (out_task + out_shared + out_b).astype(out_ref.dtype)


# ---------------------------------------------------------------------------
# Wrapper: layout glue + pallas_call
# ---------------------------------------------------------------------------
def _pick_chunk_b(batch):
    # Widen to 256 lanes only when the batch still yields >= 2 independent chunks, so the
    # v7x dual TensorCore / megacore "parallel" grid axis has work for both cores.
    # Otherwise stay at 128 lanes (fills the v5e MXU, no padding waste for tiny batches).
    if batch >= 2 * WIDE_CHUNK_B:
        return WIDE_CHUNK_B
    return BASE_CHUNK_B


def combined_value_encoder(inputs_batch, kparams):
    """inputs_batch: (B, 82) float32 -> (B, 1) float32."""
    B = inputs_batch.shape[0]
    chunk_b = _pick_chunk_b(B)
    n_lanes = chunk_b * NUM_TASKS
    nchunks = (B + chunk_b - 1) // chunk_b
    Bp = nchunks * chunk_b

    x = inputs_batch.astype(jnp.float32)
    if Bp != B:
        x = jnp.pad(x, ((0, Bp - B), (0, 0)))

    # Feature-major task slab: (E, Bp*T); column b*T + t holds task t of sample b.
    task_t = x[:, :NUM_TASKS * EMB_DIM].reshape(Bp * NUM_TASKS, EMB_DIM).T
    shared = x[:, NUM_TASKS * EMB_DIM:]                     # (Bp, 18)

    # Host-precomputed constants (loaded once; zero index_map => no re-DMA across steps).
    lane = jnp.arange(SUB_LANES, dtype=jnp.int32)
    same = (lane[:, None] // NUM_TASKS) == (lane[None, :] // NUM_TASKS)
    mask = jnp.where(same, 0.0, -1e30).astype(jnp.float32)                  # (128, 128)

    col = jnp.arange(n_lanes, dtype=jnp.int32)[None, :]
    row = jnp.arange(chunk_b, dtype=jnp.int32)[:, None]
    gsel = ((col // NUM_TASKS) == row).astype(jnp.float32)                  # (CHUNK_B, N)

    w_task_tiled = jnp.tile(kparams["w_task"], (1, chunk_b))                # (E, N) f32

    consts = (mask, gsel, w_task_tiled,
              kparams["wm_a"], kparams["w_f2"], kparams["vec_m"],
              kparams["w_l1t"], kparams["w_l2t"], kparams["b_l"], kparams["w_shared_b"])

    def _const_spec(a):
        zeros = (0,) * a.ndim
        return pl.BlockSpec(a.shape, lambda i, _z=zeros: _z)

    in_specs = [
        pl.BlockSpec((EMB_DIM, n_lanes), lambda i: (0, i)),
        pl.BlockSpec((chunk_b, SHARED_FEATURE_SIZE), lambda i: (i, 0)),
    ] + [_const_spec(a) for a in consts]

    out = pl.pallas_call(
        combined_value_encoder_kernel,
        out_shape=jax.ShapeDtypeStruct((Bp, 1), jnp.float32),
        grid_spec=pltpu.PrefetchScalarGridSpec(
            num_scalar_prefetch=0,
            grid=(nchunks,),
            in_specs=in_specs,
            out_specs=pl.BlockSpec((chunk_b, 1), lambda i: (i, 0)),
        ),
        compiler_params=pltpu.CompilerParams(
            # Chunks are independent: lets megacore / v7x dual-TC split them when nchunks > 1.
            dimension_semantics=("parallel",)),
    )(task_t, shared, *consts)
    return out[:B]


# ---------------------------------------------------------------------------
# Deterministic parameters (PyTorch layout) + packing into kernel slabs
# ---------------------------------------------------------------------------
def make_base_params(key):
    def normal(k, shape, scale=0.1):
        return scale * jax.random.normal(k, shape, dtype=jnp.float32)

    keys = iter(jax.random.split(key, NUM_MODULES * 10 + 6))
    modules = []
    for _ in range(NUM_MODULES):
        modules.append(dict(
            in_proj_weight=normal(next(keys), (3 * EMB_DIM, EMB_DIM)),
            in_proj_bias=normal(next(keys), (3 * EMB_DIM,)),
            out_proj_weight=normal(next(keys), (EMB_DIM, EMB_DIM)),
            out_proj_bias=normal(next(keys), (EMB_DIM,)),
            ln_weight=1.0 + normal(next(keys), (EMB_DIM,), 0.05),
            ln_bias=normal(next(keys), (EMB_DIM,), 0.05),
            ff1_weight=normal(next(keys), (HIDDEN_DIM, EMB_DIM)),
            ff1_bias=normal(next(keys), (HIDDEN_DIM,)),
            ff2_weight=normal(next(keys), (EMB_DIM, HIDDEN_DIM)),
            ff2_bias=normal(next(keys), (EMB_DIM,)),
        ))
    return dict(
        modules=modules,
        l1_weight=normal(next(keys), (HIDDEN_DIM, SHARED_FEATURE_SIZE)),
        l1_bias=normal(next(keys), (HIDDEN_DIM,)),
        l2_weight=normal(next(keys), (SHARED_FEATURE_SIZE, HIDDEN_DIM)),
        l2_bias=normal(next(keys), (SHARED_FEATURE_SIZE,)),
        out_weight=normal(next(keys), (1, OBS_DIM)),
        out_bias=normal(next(keys), (1,)),
    )


def to_kernel_params(base):
    """Pack the 21 PyTorch-layout tensors into batch-independent, pre-transposed slabs."""
    wm_a, w_f2, vec_m = [], [], []
    for p in base["modules"]:
        wm_a.append(jnp.concatenate(
            [p["in_proj_weight"], p["out_proj_weight"], p["ff1_weight"]], axis=0))   # (64, 8)
        w_f2.append(p["ff2_weight"])                                                  # (8, 32)
        vec_m.append(jnp.concatenate(
            [p["in_proj_bias"], p["out_proj_bias"], p["ln_weight"], p["ln_bias"],
             p["ff1_bias"], p["ff2_bias"]], axis=0).reshape(-1, 1))                   # (88, 1)

    w_out = base["out_weight"][0]                                                     # (82,)
    w_task = w_out[:NUM_TASKS * EMB_DIM].reshape(NUM_TASKS, EMB_DIM).T                # (E, T)

    return dict(
        wm_a=jnp.stack(wm_a).astype(jnp.bfloat16),            # (M, 64, 8)
        w_f2=jnp.stack(w_f2).astype(jnp.bfloat16),             # (M, 8, 32)
        vec_m=jnp.stack(vec_m),                                # (M, 88, 1) f32
        w_l1t=base["l1_weight"].T.astype(jnp.bfloat16),        # (18, 32)
        w_l2t=base["l2_weight"].T.astype(jnp.bfloat16),        # (32, 18)
        b_l=jnp.concatenate([base["l1_bias"], base["l2_bias"]]).reshape(1, -1),       # (1, 50)
        w_task=w_task,                                         # (8, 8) f32 (tiled per call)
        w_shared_b=jnp.concatenate(
            [w_out[NUM_TASKS * EMB_DIM:], base["out_bias"]]).reshape(1, -1),          # (1, 19)
    )


# ---------------------------------------------------------------------------
# Pure-JAX reference following the PyTorch forward (same bf16-input matmuls)
# ---------------------------------------------------------------------------
def _mm_bf16_ref(a, b):
    return jnp.dot(a.astype(jnp.bfloat16), b.astype(jnp.bfloat16),
                   preferred_element_type=jnp.float32)


def reference_forward(base, inputs_batch):
    scale = 1.0 / (HEAD_DIM ** 0.5)

    def one(inp):
        x = inp[:NUM_TASKS * EMB_DIM].reshape(NUM_TASKS, EMB_DIM)
        shared = inp[NUM_TASKS * EMB_DIM:]
        for p in base["modules"]:
            qkv = _mm_bf16_ref(x, p["in_proj_weight"].T) + p["in_proj_bias"]     # (T, 3E)
            q, k, v = jnp.split(qkv, 3, axis=-1)
            heads = []
            for h in range(NUM_HEADS):
                sl = slice(h * HEAD_DIM, (h + 1) * HEAD_DIM)
                qh, kh, vh = q[:, sl] * scale, k[:, sl], v[:, sl]
                s = _mm_bf16_ref(qh, kh.T)                                       # (T, T)
                s = s - jnp.max(s, axis=-1, keepdims=True)
                e = jnp.exp(s)
                pr = e / jnp.sum(e, axis=-1, keepdims=True)
                heads.append(_mm_bf16_ref(pr, vh))                               # (T, hd)
            o = jnp.concatenate(heads, axis=-1)                                  # (T, E)
            attn = _mm_bf16_ref(o, p["out_proj_weight"].T) + p["out_proj_bias"]

            def ln(y):
                mu = jnp.mean(y, axis=-1, keepdims=True)
                var = jnp.mean(jnp.square(y - mu), axis=-1, keepdims=True)
                return (y - mu) * lax.rsqrt(var + LN_EPS) * p["ln_weight"] + p["ln_bias"]

            x = ln(x + attn)
            ff = _mm_bf16_ref(
                jnp.maximum(_mm_bf16_ref(x, p["ff1_weight"].T) + p["ff1_bias"], 0.0),
                p["ff2_weight"].T) + p["ff2_bias"]
            x = ln(x + ff)                                    # same norm reused, as in torch

        s1 = jnp.maximum(_mm_bf16_ref(shared[None, :], base["l1_weight"].T)
                         + base["l1_bias"], 0.0)
        s2 = jnp.maximum(_mm_bf16_ref(s1, base["l2_weight"].T) + base["l2_bias"], 0.0)[0]
        w_out = base["out_weight"][0]
        val = (jnp.sum(x.reshape(-1) * w_out[:NUM_TASKS * EMB_DIM])
               + jnp.sum(s2 * w_out[NUM_TASKS * EMB_DIM:]) + base["out_bias"][0])
        return val[None]                                      # (1,)

    return jax.vmap(one)(inputs_batch)                        # (B, 1)


if __name__ == "__main__":
    key = jax.random.PRNGKey(0)
    pkey, xkey = jax.random.split(key)

    base = make_base_params(pkey)
    kparams = to_kernel_params(base)

    # B=16 exercises the 128-lane single-chunk path; B=64 exercises the widened 256-lane
    # chunks (2 grid steps, constant blocks reused across steps, megacore-splittable).
    for bsz in (BATCH, 64):
        inputs_batch = jax.random.normal(jax.random.fold_in(xkey, bsz),
                                         (bsz, OBS_DIM), dtype=jnp.float32)
        out = jax.block_until_ready(combined_value_encoder(inputs_batch, kparams))
        assert out.shape == (bsz, 1)

        ref = jax.block_until_ready(reference_forward(base, inputs_batch))
        max_err = float(jnp.max(jnp.abs(out - ref)))
        # bf16 MXU inputs in both kernel and reference; the kernel additionally uses the EUP
        # approximate reciprocal for the softmax denominator -> compare at 5e-3.
        assert max_err < 5e-3, f"mismatch vs reference (B={bsz}): {max_err}"

    print("KERNEL_OK")
</pallas_src>

<mosaic_0001>
module attributes {stable_mosaic.version = 11 : i64} {
  func.func @combined_value_encoder_kernel(%arg0: i32, %arg1: memref<8x128xf32, #tpu.memory_space<vmem>>, %arg2: memref<16x18xf32, #tpu.memory_space<vmem>>, %arg3: memref<128x128xf32, #tpu.memory_space<vmem>>, %arg4: memref<16x128xf32, #tpu.memory_space<vmem>>, %arg5: memref<8x128xf32, #tpu.memory_space<vmem>>, %arg6: memref<2x64x8xbf16, #tpu.memory_space<vmem>>, %arg7: memref<2x8x32xbf16, #tpu.memory_space<vmem>>, %arg8: memref<2x88x1xf32, #tpu.memory_space<vmem>>, %arg9: memref<18x32xbf16, #tpu.memory_space<vmem>>, %arg10: memref<32x18xbf16, #tpu.memory_space<vmem>>, %arg11: memref<1x50xf32, #tpu.memory_space<vmem>>, %arg12: memref<1x19xf32, #tpu.memory_space<vmem>>, %arg13: memref<16x1xf32, #tpu.memory_space<vmem>>) attributes {dimension_semantics = [#tpu.dimension_semantics<parallel>], iteration_bounds = array<i64: 1>, scalar_prefetch = 0 : i64, scratch_operands = 0 : i64, tpu.core_type = #tpu.core_type<tc>, window_params = [{transform_indices = @transform_0, window_bounds = array<i64: 8, 128>}, {transform_indices = @transform_1, window_bounds = array<i64: 16, 18>}, {pipeline_mode = #tpu.pipeline_mode<synchronous>, transform_indices = @transform_2, window_bounds = array<i64: 128, 128>}, {pipeline_mode = #tpu.pipeline_mode<synchronous>, transform_indices = @transform_3, window_bounds = array<i64: 16, 128>}, {pipeline_mode = #tpu.pipeline_mode<synchronous>, transform_indices = @transform_4, window_bounds = array<i64: 8, 128>}, {pipeline_mode = #tpu.pipeline_mode<synchronous>, transform_indices = @transform_5, window_bounds = array<i64: 2, 64, 8>}, {pipeline_mode = #tpu.pipeline_mode<synchronous>, transform_indices = @transform_6, window_bounds = array<i64: 2, 8, 32>}, {pipeline_mode = #tpu.pipeline_mode<synchronous>, transform_indices = @transform_7, window_bounds = array<i64: 2, 88, 1>}, {pipeline_mode = #tpu.pipeline_mode<synchronous>, transform_indices = @transform_8, window_bounds = array<i64: 18, 32>}, {pipeline_mode = #tpu.pipeline_mode<synchronous>, transform_indices = @transform_9, window_bounds = array<i64: 32, 18>}, {pipeline_mode = #tpu.pipeline_mode<synchronous>, transform_indices = @transform_10, window_bounds = array<i64: 1, 50>}, {pipeline_mode = #tpu.pipeline_mode<synchronous>, transform_indices = @transform_11, window_bounds = array<i64: 1, 19>}, {transform_indices = @transform_12, window_bounds = array<i64: 16, 1>}]} {
    %c0 = arith.constant 0 : index
    %c0_0 = arith.constant 0 : index
    %0 = vector.load %arg1[%c0, %c0_0] : memref<8x128xf32, #tpu.memory_space<vmem>>, vector<8x128xf32>
    %c0_1 = arith.constant 0 : index
    %c0_2 = arith.constant 0 : index
    %1 = vector.load %arg3[%c0_1, %c0_2] : memref<128x128xf32, #tpu.memory_space<vmem>>, vector<128x128xf32>
    %c0_3 = arith.constant 0 : index
    %c0_4 = arith.constant 0 : index
    %c0_5 = arith.constant 0 : index
    %2 = vector.load %arg6[%c0_3, %c0_4, %c0_5] : memref<2x64x8xbf16, #tpu.memory_space<vmem>>, vector<1x64x8xbf16>
    %3 = vector.shape_cast %2 : vector<1x64x8xbf16> to vector<64x8xbf16>
    %c0_6 = arith.constant 0 : index
    %c0_7 = arith.constant 0 : index
    %c0_8 = arith.constant 0 : index
    %4 = vector.load %arg8[%c0_6, %c0_7, %c0_8] : memref<2x88x1xf32, #tpu.memory_space<vmem>>, vector<1x88x1xf32>
    %5 = vector.shape_cast %4 : vector<1x88x1xf32> to vector<88x1xf32>
    %6 = vector.extract_strided_slice %3 {offsets = [0, 0], sizes = [24, 8], strides = [1, 1]} : vector<64x8xbf16> to vector<24x8xbf16>
    %7 = vector.extract_strided_slice %3 {offsets = [24, 0], sizes = [8, 8], strides = [1, 1]} : vector<64x8xbf16> to vector<8x8xbf16>
    %8 = vector.extract_strided_slice %3 {offsets = [32, 0], sizes = [32, 8], strides = [1, 1]} : vector<64x8xbf16> to vector<32x8xbf16>
    %c0_9 = arith.constant 0 : index
    %c0_10 = arith.constant 0 : index
    %c0_11 = arith.constant 0 : index
    %9 = vector.load %arg7[%c0_9, %c0_10, %c0_11] : memref<2x8x32xbf16, #tpu.memory_space<vmem>>, vector<1x8x32xbf16>
    %10 = vector.shape_cast %9 : vector<1x8x32xbf16> to vector<8x32xbf16>
    %11 = vector.extract_strided_slice %5 {offsets = [0, 0], sizes = [24, 1], strides = [1, 1]} : vector<88x1xf32> to vector<24x1xf32>
    %12 = vector.extract_strided_slice %5 {offsets = [24, 0], sizes = [8, 1], strides = [1, 1]} : vector<88x1xf32> to vector<8x1xf32>
    %13 = vector.extract_strided_slice %5 {offsets = [32, 0], sizes = [8, 1], strides = [1, 1]} : vector<88x1xf32> to vector<8x1xf32>
    %14 = vector.extract_strided_slice %5 {offsets = [40, 0], sizes = [8, 1], strides = [1, 1]} : vector<88x1xf32> to vector<8x1xf32>
    %15 = vector.extract_strided_slice %5 {offsets = [48, 0], sizes = [32, 1], strides = [1, 1]} : vector<88x1xf32> to vector<32x1xf32>
    %16 = vector.extract_strided_slice %5 {offsets = [80, 0], sizes = [8, 1], strides = [1, 1]} : vector<88x1xf32> to vector<8x1xf32>
    %17 = arith.truncf %0 : vector<8x128xf32> to vector<8x128xbf16>
    %cst = arith.constant dense<0.000000e+00> : vector<24x128xf32>
    %18 = tpu.matmul %6, %17, %cst {dimension_numbers = #tpu.dot_dimension_numbers<[1], [0], [0], [1], [0, 0, 1, 1], [], []>} : vector<24x8xbf16>, vector<8x128xbf16>, vector<24x128xf32> -> vector<24x128xf32>
    %19 = vector.broadcast %11 : vector<24x1xf32> to vector<24x128xf32>
    %20 = arith.addf %18, %19 : vector<24x128xf32>
    %21 = vector.extract_strided_slice %20 {offsets = [0, 0], sizes = [8, 128], strides = [1, 1]} : vector<24x128xf32> to vector<8x128xf32>
    %cst_12 = arith.constant 5.000000e-01 : f32
    %22 = vector.broadcast %cst_12 : f32 to vector<8x128xf32>
    %23 = arith.mulf %21, %22 : vector<8x128xf32>
    %24 = tpu.transpose %23, [1, 0] : vector<8x128xf32> -> vector<128x8xf32>
    %25 = vector.extract_strided_slice %20 {offsets = [8, 0], sizes = [4, 128], strides = [1, 1]} : vector<24x128xf32> to vector<4x128xf32>
    %26 = vector.extract_strided_slice %20 {offsets = [16, 0], sizes = [4, 128], strides = [1, 1]} : vector<24x128xf32> to vector<4x128xf32>
    %27 = vector.extract_strided_slice %24 {offsets = [0, 0], sizes = [128, 4], strides = [1, 1]} : vector<128x8xf32> to vector<128x4xf32>
    %28 = arith.truncf %27 : vector<128x4xf32> to vector<128x4xbf16>
    %29 = arith.truncf %25 : vector<4x128xf32> to vector<4x128xbf16>
    %cst_13 = arith.constant dense<0.000000e+00> : vector<128x128xf32>
    %30 = tpu.matmul %28, %29, %cst_13 {dimension_numbers = #tpu.dot_dimension_numbers<[1], [0], [0], [1], [0, 0, 1, 1], [], []>} : vector<128x4xbf16>, vector<4x128xbf16>, vector<128x128xf32> -> vector<128x128xf32>
    %31 = arith.addf %30, %1 : vector<128x128xf32>
    %cst_14 = arith.constant dense<0xFF800000> : vector<128xf32>
    %32 = vector.multi_reduction <maximumf>, %31, %cst_14 [1] : vector<128x128xf32> to vector<128xf32>
    %33 = vector.shape_cast %32 : vector<128xf32> to vector<128x1xf32>
    %34 = vector.broadcast %33 : vector<128x1xf32> to vector<128x128xf32>
    %35 = arith.subf %31, %34 : vector<128x128xf32>
    %36 = math.exp %35 : vector<128x128xf32>
    %cst_15 = arith.constant dense<0.000000e+00> : vector<128xf32>
    %37 = vector.multi_reduction <add>, %36, %cst_15 [1] : vector<128x128xf32> to vector<128xf32>
    %38 = vector.shape_cast %37 : vector<128xf32> to vector<128x1xf32>
    %39 = tpu.reciprocal %38 {approx = true} : vector<128x1xf32> -> vector<128x1xf32>
    %40 = vector.broadcast %39 : vector<128x1xf32> to vector<128x128xf32>
    %41 = arith.mulf %36, %40 : vector<128x128xf32>
    %42 = arith.truncf %26 : vector<4x128xf32> to vector<4x128xbf16>
    %43 = arith.truncf %41 : vector<128x128xf32> to vector<128x128xbf16>
    %cst_16 = arith.constant dense<0.000000e+00> : vector<4x128xf32>
    %44 = tpu.matmul %42, %43, %cst_16 {dimension_numbers = #tpu.dot_dimension_numbers<[1], [1], [0], [0], [0, 0, 1, 0], [], []>} : vector<4x128xbf16>, vector<128x128xbf16>, vector<4x128xf32> -> vector<4x128xf32>
    %45 = vector.extract_strided_slice %20 {offsets = [12, 0], sizes = [4, 128], strides = [1, 1]} : vector<24x128xf32> to vector<4x128xf32>
    %46 = vector.extract_strided_slice %20 {offsets = [20, 0], sizes = [4, 128], strides = [1, 1]} : vector<24x128xf32> to vector<4x128xf32>
    %47 = vector.extract_strided_slice %24 {offsets = [0, 4], sizes = [128, 4], strides = [1, 1]} : vector<128x8xf32> to vector<128x4xf32>
    %48 = arith.truncf %47 : vector<128x4xf32> to vector<128x4xbf16>
    %49 = arith.truncf %45 : vector<4x128xf32> to vector<4x128xbf16>
    %cst_17 = arith.constant dense<0.000000e+00> : vector<128x128xf32>
    %50 = tpu.matmul %48, %49, %cst_17 {dimension_numbers = #tpu.dot_dimension_numbers<[1], [0], [0], [1], [0, 0, 1, 1], [], []>} : vector<128x4xbf16>, vector<4x128xbf16>, vector<128x128xf32> -> vector<128x128xf32>
    %51 = arith.addf %50, %1 : vector<128x128xf32>
    %cst_18 = arith.constant dense<0xFF800000> : vector<128xf32>
    %52 = vector.multi_reduction <maximumf>, %51, %cst_18 [1] : vector<128x128xf32> to vector<128xf32>
    %53 = vector.shape_cast %52 : vector<128xf32> to vector<128x1xf32>
    %54 = vector.broadcast %53 : vector<128x1xf32> to vector<128x128xf32>
    %55 = arith.subf %51, %54 : vector<128x128xf32>
    %56 = math.exp %55 : vector<128x128xf32>
    %cst_19 = arith.constant dense<0.000000e+00> : vector<128xf32>
    %57 = vector.multi_reduction <add>, %56, %cst_19 [1] : vector<128x128xf32> to vector<128xf32>
    %58 = vector.shape_cast %57 : vector<128xf32> to vector<128x1xf32>
    %59 = tpu.reciprocal %58 {approx = true} : vector<128x1xf32> -> vector<128x1xf32>
    %60 = vector.broadcast %59 : vector<128x1xf32> to vector<128x128xf32>
    %61 = arith.mulf %56, %60 : vector<128x128xf32>
    %62 = arith.truncf %46 : vector<4x128xf32> to vector<4x128xbf16>
    %63 = arith.truncf %61 : vector<128x128xf32> to vector<128x128xbf16>
    %cst_20 = arith.constant dense<0.000000e+00> : vector<4x128xf32>
    %64 = tpu.matmul %62, %63, %cst_20 {dimension_numbers = #tpu.dot_dimension_numbers<[1], [1], [0], [0], [0, 0, 1, 0], [], []>} : vector<4x128xbf16>, vector<128x128xbf16>, vector<4x128xf32> -> vector<4x128xf32>
    %65 = tpu.concatenate %44, %64 in 0 : vector<4x128xf32>, vector<4x128xf32> -> vector<8x128xf32>
    %66 = arith.truncf %65 : vector<8x128xf32> to vector<8x128xbf16>
    %cst_21 = arith.constant dense<0.000000e+00> : vector<8x128xf32>
    %67 = tpu.matmul %7, %66, %cst_21 {dimension_numbers = #tpu.dot_dimension_numbers<[1], [0], [0], [1], [0, 0, 1, 1], [], []>} : vector<8x8xbf16>, vector<8x128xbf16>, vector<8x128xf32> -> vector<8x128xf32>
    %68 = vector.broadcast %12 : vector<8x1xf32> to vector<8x128xf32>
    %69 = arith.addf %67, %68 : vector<8x128xf32>
    %70 = arith.addf %0, %69 : vector<8x128xf32>
    %cst_22 = arith.constant dense<0.000000e+00> : vector<128xf32>
    %71 = vector.multi_reduction <add>, %70, %cst_22 [0] : vector<8x128xf32> to vector<128xf32>
    %72 = vector.shape_cast %71 : vector<128xf32> to vector<1x128xf32>
    %cst_23 = arith.constant 8.000000e+00 : f32
    %73 = vector.broadcast %cst_23 : f32 to vector<1x128xf32>
    %74 = arith.divf %72, %73 : vector<1x128xf32>
    %75 = vector.broadcast %74 : vector<1x128xf32> to vector<8x128xf32>
    %76 = arith.subf %70, %75 : vector<8x128xf32>
    %77 = arith.mulf %76, %76 : vector<8x128xf32>
    %cst_24 = arith.constant dense<0.000000e+00> : vector<128xf32>
    %78 = vector.multi_reduction <add>, %77, %cst_24 [0] : vector<8x128xf32> to vector<128xf32>
    %79 = vector.shape_cast %78 : vector<128xf32> to vector<1x128xf32>
    %cst_25 = arith.constant 8.000000e+00 : f32
    %80 = vector.broadcast %cst_25 : f32 to vector<1x128xf32>
    %81 = arith.divf %79, %80 : vector<1x128xf32>
    %82 = vector.broadcast %74 : vector<1x128xf32> to vector<8x128xf32>
    %83 = arith.subf %70, %82 : vector<8x128xf32>
    %cst_26 = arith.constant 9.99999974E-6 : f32
    %84 = vector.broadcast %cst_26 : f32 to vector<1x128xf32>
    %85 = arith.addf %81, %84 : vector<1x128xf32>
    %86 = math.rsqrt %85 : vector<1x128xf32>
    %87 = vector.broadcast %86 : vector<1x128xf32> to vector<8x128xf32>
    %88 = arith.mulf %83, %87 : vector<8x128xf32>
    %89 = vector.broadcast %13 : vector<8x1xf32> to vector<8x128xf32>
    %90 = arith.mulf %88, %89 : vector<8x128xf32>
    %91 = vector.broadcast %14 : vector<8x1xf32> to vector<8x128xf32>
    %92 = arith.addf %90, %91 : vector<8x128xf32>
    %93 = arith.truncf %92 : vector<8x128xf32> to vector<8x128xbf16>
    %cst_27 = arith.constant dense<0.000000e+00> : vector<32x128xf32>
    %94 = tpu.matmul %8, %93, %cst_27 {dimension_numbers = #tpu.dot_dimension_numbers<[1], [0], [0], [1], [0, 0, 1, 1], [], []>} : vector<32x8xbf16>, vector<8x128xbf16>, vector<32x128xf32> -> vector<32x128xf32>
    %95 = vector.broadcast %15 : vector<32x1xf32> to vector<32x128xf32>
    %96 = arith.addf %94, %95 : vector<32x128xf32>
    %cst_28 = arith.constant 0.000000e+00 : f32
    %97 = vector.broadcast %cst_28 : f32 to vector<32x128xf32>
    %98 = arith.maximumf %96, %97 : vector<32x128xf32>
    %99 = arith.truncf %98 : vector<32x128xf32> to vector<32x128xbf16>
    %cst_29 = arith.constant dense<0.000000e+00> : vector<8x128xf32>
    %100 = tpu.matmul %10, %99, %cst_29 {dimension_numbers = #tpu.dot_dimension_numbers<[1], [0], [0], [1], [0, 0, 1, 1], [], []>} : vector<8x32xbf16>, vector<32x128xbf16>, vector<8x128xf32> -> vector<8x128xf32>
    %101 = vector.broadcast %16 : vector<8x1xf32> to vector<8x128xf32>
    %102 = arith.addf %100, %101 : vector<8x128xf32>
    %103 = arith.addf %92, %102 : vector<8x128xf32>
    %cst_30 = arith.constant dense<0.000000e+00> : vector<128xf32>
    %104 = vector.multi_reduction <add>, %103, %cst_30 [0] : vector<8x128xf32> to vector<128xf32>
    %105 = vector.shape_cast %104 : vector<128xf32> to vector<1x128xf32>
    %cst_31 = arith.constant 8.000000e+00 : f32
    %106 = vector.broadcast %cst_31 : f32 to vector<1x128xf32>
    %107 = arith.divf %105, %106 : vector<1x128xf32>
    %108 = vector.broadcast %107 : vector<1x128xf32> to vector<8x128xf32>
    %109 = arith.subf %103, %108 : vector<8x128xf32>
    %110 = arith.mulf %109, %109 : vector<8x128xf32>
    %cst_32 = arith.constant dense<0.000000e+00> : vector<128xf32>
    %111 = vector.multi_reduction <add>, %110, %cst_32 [0] : vector<8x128xf32> to vector<128xf32>
    %112 = vector.shape_cast %111 : vector<128xf32> to vector<1x128xf32>
    %cst_33 = arith.constant 8.000000e+00 : f32
    %113 = vector.broadcast %cst_33 : f32 to vector<1x128xf32>
    %114 = arith.divf %112, %113 : vector<1x128xf32>
    %115 = vector.broadcast %107 : vector<1x128xf32> to vector<8x128xf32>
    %116 = arith.subf %103, %115 : vector<8x128xf32>
    %cst_34 = arith.constant 9.99999974E-6 : f32
    %117 = vector.broadcast %cst_34 : f32 to vector<1x128xf32>
    %118 = arith.addf %114, %117 : vector<1x128xf32>
    %119 = math.rsqrt %118 : vector<1x128xf32>
    %120 = vector.broadcast %119 : vector<1x128xf32> to vector<8x128xf32>
    %121 = arith.mulf %116, %120 : vector<8x128xf32>
    %122 = vector.broadcast %13 : vector<8x1xf32> to vector<8x128xf32>
    %123 = arith.mulf %121, %122 : vector<8x128xf32>
    %124 = vector.broadcast %14 : vector<8x1xf32> to vector<8x128xf32>
    %125 = arith.addf %123, %124 : vector<8x128xf32>
    %c1 = arith.constant 1 : index
    %c0_35 = arith.constant 0 : index
    %c0_36 = arith.constant 0 : index
    %126 = vector.load %arg6[%c1, %c0_35, %c0_36] : memref<2x64x8xbf16, #tpu.memory_space<vmem>>, vector<1x64x8xbf16>
    %127 = vector.shape_cast %126 : vector<1x64x8xbf16> to vector<64x8xbf16>
    %c1_37 = arith.constant 1 : index
    %c0_38 = arith.constant 0 : index
    %c0_39 = arith.constant 0 : index
    %128 = vector.load %arg8[%c1_37, %c0_38, %c0_39] : memref<2x88x1xf32, #tpu.memory_space<vmem>>, vector<1x88x1xf32>
    %129 = vector.shape_cast %128 : vector<1x88x1xf32> to vector<88x1xf32>
    %130 = vector.extract_strided_slice %127 {offsets = [0, 0], sizes = [24, 8], strides = [1, 1]} : vector<64x8xbf16> to vector<24x8xbf16>
    %131 = vector.extract_strided_slice %127 {offsets = [24, 0], sizes = [8, 8], strides = [1, 1]} : vector<64x8xbf16> to vector<8x8xbf16>
    %132 = vector.extract_strided_slice %127 {offsets = [32, 0], sizes = [32, 8], strides = [1, 1]} : vector<64x8xbf16> to vector<32x8xbf16>
    %c1_40 = arith.constant 1 : index
    %c0_41 = arith.constant 0 : index
    %c0_42 = arith.constant 0 : index
    %133 = vector.load %arg7[%c1_40, %c0_41, %c0_42] : memref<2x8x32xbf16, #tpu.memory_space<vmem>>, vector<1x8x32xbf16>
    %134 = vector.shape_cast %133 : vector<1x8x32xbf16> to vector<8x32xbf16>
    %135 = vector.extract_strided_slice %129 {offsets = [0, 0], sizes = [24, 1], strides = [1, 1]} : vector<88x1xf32> to vector<24x1xf32>
    %136 = vector.extract_strided_slice %129 {offsets = [24, 0], sizes = [8, 1], strides = [1, 1]} : vector<88x1xf32> to vector<8x1xf32>
    %137 = vector.extract_strided_slice %129 {offsets = [32, 0], sizes = [8, 1], strides = [1, 1]} : vector<88x1xf32> to vector<8x1xf32>
    %138 = vector.extract_strided_slice %129 {offsets = [40, 0], sizes = [8, 1], strides = [1, 1]} : vector<88x1xf32> to vector<8x1xf32>
    %139 = vector.extract_strided_slice %129 {offsets = [48, 0], sizes = [32, 1], strides = [1, 1]} : vector<88x1xf32> to vector<32x1xf32>
    %140 = vector.extract_strided_slice %129 {offsets = [80, 0], sizes = [8, 1], strides = [1, 1]} : vector<88x1xf32> to vector<8x1xf32>
    %141 = arith.truncf %125 : vector<8x128xf32> to vector<8x128xbf16>
    %cst_43 = arith.constant dense<0.000000e+00> : vector<24x128xf32>
    %142 = tpu.matmul %130, %141, %cst_43 {dimension_numbers = #tpu.dot_dimension_numbers<[1], [0], [0], [1], [0, 0, 1, 1], [], []>} : vector<24x8xbf16>, vector<8x128xbf16>, vector<24x128xf32> -> vector<24x128xf32>
    %143 = vector.broadcast %135 : vector<24x1xf32> to vector<24x128xf32>
    %144 = arith.addf %142, %143 : vector<24x128xf32>
    %145 = vector.extract_strided_slice %144 {offsets = [0, 0], sizes = [8, 128], strides = [1, 1]} : vector<24x128xf32> to vector<8x128xf32>
    %cst_44 = arith.constant 5.000000e-01 : f32
    %146 = vector.broadcast %cst_44 : f32 to vector<8x128xf32>
    %147 = arith.mulf %145, %146 : vector<8x128xf32>
    %148 = tpu.transpose %147, [1, 0] : vector<8x128xf32> -> vector<128x8xf32>
    %149 = vector.extract_strided_slice %144 {offsets = [8, 0], sizes = [4, 128], strides = [1, 1]} : vector<24x128xf32> to vector<4x128xf32>
    %150 = vector.extract_strided_slice %144 {offsets = [16, 0], sizes = [4, 128], strides = [1, 1]} : vector<24x128xf32> to vector<4x128xf32>
    %151 = vector.extract_strided_slice %148 {offsets = [0, 0], sizes = [128, 4], strides = [1, 1]} : vector<128x8xf32> to vector<128x4xf32>
    %152 = arith.truncf %151 : vector<128x4xf32> to vector<128x4xbf16>
    %153 = arith.truncf %149 : vector<4x128xf32> to vector<4x128xbf16>
    %cst_45 = arith.constant dense<0.000000e+00> : vector<128x128xf32>
    %154 = tpu.matmul %152, %153, %cst_45 {dimension_numbers = #tpu.dot_dimension_numbers<[1], [0], [0], [1], [0, 0, 1, 1], [], []>} : vector<128x4xbf16>, vector<4x128xbf16>, vector<128x128xf32> -> vector<128x128xf32>
    %155 = arith.addf %154, %1 : vector<128x128xf32>
    %cst_46 = arith.constant dense<0xFF800000> : vector<128xf32>
    %156 = vector.multi_reduction <maximumf>, %155, %cst_46 [1] : vector<128x128xf32> to vector<128xf32>
    %157 = vector.shape_cast %156 : vector<128xf32> to vector<128x1xf32>
    %158 = vector.broadcast %157 : vector<128x1xf32> to vector<128x128xf32>
    %159 = arith.subf %155, %158 : vector<128x128xf32>
    %160 = math.exp %159 : vector<128x128xf32>
    %cst_47 = arith.constant dense<0.000000e+00> : vector<128xf32>
    %161 = vector.multi_reduction <add>, %160, %cst_47 [1] : vector<128x128xf32> to vector<128xf32>
    %162 = vector.shape_cast %161 : vector<128xf32> to vector<128x1xf32>
    %163 = tpu.reciprocal %162 {approx = true} : vector<128x1xf32> -> vector<128x1xf32>
    %164 = vector.broadcast %163 : vector<128x1xf32> to vector<128x128xf32>
    %165 = arith.mulf %160, %164 : vector<128x128xf32>
    %166 = arith.truncf %150 : vector<4x128xf32> to vector<4x128xbf16>
    %167 = arith.truncf %165 : vector<128x128xf32> to vector<128x128xbf16>
    %cst_48 = arith.constant dense<0.000000e+00> : vector<4x128xf32>
    %168 = tpu.matmul %166, %167, %cst_48 {dimension_numbers = #tpu.dot_dimension_numbers<[1], [1], [0], [0], [0, 0, 1, 0], [], []>} : vector<4x128xbf16>, vector<128x128xbf16>, vector<4x128xf32> -> vector<4x128xf32>
    %169 = vector.extract_strided_slice %144 {offsets = [12, 0], sizes = [4, 128], strides = [1, 1]} : vector<24x128xf32> to vector<4x128xf32>
    %170 = vector.extract_strided_slice %144 {offsets = [20, 0], sizes = [4, 128], strides = [1, 1]} : vector<24x128xf32> to vector<4x128xf32>
    %171 = vector.extract_strided_slice %148 {offsets = [0, 4], sizes = [128, 4], strides = [1, 1]} : vector<128x8xf32> to vector<128x4xf32>
    %172 = arith.truncf %171 : vector<128x4xf32> to vector<128x4xbf16>
    %173 = arith.truncf %169 : vector<4x128xf32> to vector<4x128xbf16>
    %cst_49 = arith.constant dense<0.000000e+00> : vector<128x128xf32>
    %174 = tpu.matmul %172, %173, %cst_49 {dimension_numbers = #tpu.dot_dimension_numbers<[1], [0], [0], [1], [0, 0, 1, 1], [], []>} : vector<128x4xbf16>, vector<4x128xbf16>, vector<128x128xf32> -> vector<128x128xf32>
    %175 = arith.addf %174, %1 : vector<128x128xf32>
    %cst_50 = arith.constant dense<0xFF800000> : vector<128xf32>
    %176 = vector.multi_reduction <maximumf>, %175, %cst_50 [1] : vector<128x128xf32> to vector<128xf32>
    %177 = vector.shape_cast %176 : vector<128xf32> to vector<128x1xf32>
    %178 = vector.broadcast %177 : vector<128x1xf32> to vector<128x128xf32>
    %179 = arith.subf %175, %178 : vector<128x128xf32>
    %180 = math.exp %179 : vector<128x128xf32>
    %cst_51 = arith.constant dense<0.000000e+00> : vector<128xf32>
    %181 = vector.multi_reduction <add>, %180, %cst_51 [1] : vector<128x128xf32> to vector<128xf32>
    %182 = vector.shape_cast %181 : vector<128xf32> to vector<128x1xf32>
    %183 = tpu.reciprocal %182 {approx = true} : vector<128x1xf32> -> vector<128x1xf32>
    %184 = vector.broadcast %183 : vector<128x1xf32> to vector<128x128xf32>
    %185 = arith.mulf %180, %184 : vector<128x128xf32>
    %186 = arith.truncf %170 : vector<4x128xf32> to vector<4x128xbf16>
    %187 = arith.truncf %185 : vector<128x128xf32> to vector<128x128xbf16>
    %cst_52 = arith.constant dense<0.000000e+00> : vector<4x128xf32>
    %188 = tpu.matmul %186, %187, %cst_52 {dimension_numbers = #tpu.dot_dimension_numbers<[1], [1], [0], [0], [0, 0, 1, 0], [], []>} : vector<4x128xbf16>, vector<128x128xbf16>, vector<4x128xf32> -> vector<4x128xf32>
    %189 = tpu.concatenate %168, %188 in 0 : vector<4x128xf32>, vector<4x128xf32> -> vector<8x128xf32>
    %190 = arith.truncf %189 : vector<8x128xf32> to vector<8x128xbf16>
    %cst_53 = arith.constant dense<0.000000e+00> : vector<8x128xf32>
    %191 = tpu.matmul %131, %190, %cst_53 {dimension_numbers = #tpu.dot_dimension_numbers<[1], [0], [0], [1], [0, 0, 1, 1], [], []>} : vector<8x8xbf16>, vector<8x128xbf16>, vector<8x128xf32> -> vector<8x128xf32>
    %192 = vector.broadcast %136 : vector<8x1xf32> to vector<8x128xf32>
    %193 = arith.addf %191, %192 : vector<8x128xf32>
    %194 = arith.addf %125, %193 : vector<8x128xf32>
    %cst_54 = arith.constant dense<0.000000e+00> : vector<128xf32>
    %195 = vector.multi_reduction <add>, %194, %cst_54 [0] : vector<8x128xf32> to vector<128xf32>
    %196 = vector.shape_cast %195 : vector<128xf32> to vector<1x128xf32>
    %cst_55 = arith.constant 8.000000e+00 : f32
    %197 = vector.broadcast %cst_55 : f32 to vector<1x128xf32>
    %198 = arith.divf %196, %197 : vector<1x128xf32>
    %199 = vector.broadcast %198 : vector<1x128xf32> to vector<8x128xf32>
    %200 = arith.subf %194, %199 : vector<8x128xf32>
    %201 = arith.mulf %200, %200 : vector<8x128xf32>
    %cst_56 = arith.constant dense<0.000000e+00> : vector<128xf32>
    %202 = vector.multi_reduction <add>, %201, %cst_56 [0] : vector<8x128xf32> to vector<128xf32>
    %203 = vector.shape_cast %202 : vector<128xf32> to vector<1x128xf32>
    %cst_57 = arith.constant 8.000000e+00 : f32
    %204 = vector.broadcast %cst_57 : f32 to vector<1x128xf32>
    %205 = arith.divf %203, %204 : vector<1x128xf32>
    %206 = vector.broadcast %198 : vector<1x128xf32> to vector<8x128xf32>
    %207 = arith.subf %194, %206 : vector<8x128xf32>
    %cst_58 = arith.constant 9.99999974E-6 : f32
    %208 = vector.broadcast %cst_58 : f32 to vector<1x128xf32>
    %209 = arith.addf %205, %208 : vector<1x128xf32>
    %210 = math.rsqrt %209 : vector<1x128xf32>
    %211 = vector.broadcast %210 : vector<1x128xf32> to vector<8x128xf32>
    %212 = arith.mulf %207, %211 : vector<8x128xf32>
    %213 = vector.broadcast %137 : vector<8x1xf32> to vector<8x128xf32>
    %214 = arith.mulf %212, %213 : vector<8x128xf32>
    %215 = vector.broadcast %138 : vector<8x1xf32> to vector<8x128xf32>
    %216 = arith.addf %214, %215 : vector<8x128xf32>
    %217 = arith.truncf %216 : vector<8x128xf32> to vector<8x128xbf16>
    %cst_59 = arith.constant dense<0.000000e+00> : vector<32x128xf32>
    %218 = tpu.matmul %132, %217, %cst_59 {dimension_numbers = #tpu.dot_dimension_numbers<[1], [0], [0], [1], [0, 0, 1, 1], [], []>} : vector<32x8xbf16>, vector<8x128xbf16>, vector<32x128xf32> -> vector<32x128xf32>
    %219 = vector.broadcast %139 : vector<32x1xf32> to vector<32x128xf32>
    %220 = arith.addf %218, %219 : vector<32x128xf32>
    %cst_60 = arith.constant 0.000000e+00 : f32
    %221 = vector.broadcast %cst_60 : f32 to vector<32x128xf32>
    %222 = arith.maximumf %220, %221 : vector<32x128xf32>
    %223 = arith.truncf %222 : vector<32x128xf32> to vector<32x128xbf16>
    %cst_61 = arith.constant dense<0.000000e+00> : vector<8x128xf32>
    %224 = tpu.matmul %134, %223, %cst_61 {dimension_numbers = #tpu.dot_dimension_numbers<[1], [0], [0], [1], [0, 0, 1, 1], [], []>} : vector<8x32xbf16>, vector<32x128xbf16>, vector<8x128xf32> -> vector<8x128xf32>
    %225 = vector.broadcast %140 : vector<8x1xf32> to vector<8x128xf32>
    %226 = arith.addf %224, %225 : vector<8x128xf32>
    %227 = arith.addf %216, %226 : vector<8x128xf32>
    %cst_62 = arith.constant dense<0.000000e+00> : vector<128xf32>
    %228 = vector.multi_reduction <add>, %227, %cst_62 [0] : vector<8x128xf32> to vector<128xf32>
    %229 = vector.shape_cast %228 : vector<128xf32> to vector<1x128xf32>
    %cst_63 = arith.constant 8.000000e+00 : f32
    %230 = vector.broadcast %cst_63 : f32 to vector<1x128xf32>
    %231 = arith.divf %229, %230 : vector<1x128xf32>
    %232 = vector.broadcast %231 : vector<1x128xf32> to vector<8x128xf32>
    %233 = arith.subf %227, %232 : vector<8x128xf32>
    %234 = arith.mulf %233, %233 : vector<8x128xf32>
    %cst_64 = arith.constant dense<0.000000e+00> : vector<128xf32>
    %235 = vector.multi_reduction <add>, %234, %cst_64 [0] : vector<8x128xf32> to vector<128xf32>
    %236 = vector.shape_cast %235 : vector<128xf32> to vector<1x128xf32>
    %cst_65 = arith.constant 8.000000e+00 : f32
    %237 = vector.broadcast %cst_65 : f32 to vector<1x128xf32>
    %238 = arith.divf %236, %237 : vector<1x128xf32>
    %239 = vector.broadcast %231 : vector<1x128xf32> to vector<8x128xf32>
    %240 = arith.subf %227, %239 : vector<8x128xf32>
    %cst_66 = arith.constant 9.99999974E-6 : f32
    %241 = vector.broadcast %cst_66 : f32 to vector<1x128xf32>
    %242 = arith.addf %238, %241 : vector<1x128xf32>
    %243 = math.rsqrt %242 : vector<1x128xf32>
    %244 = vector.broadcast %243 : vector<1x128xf32> to vector<8x128xf32>
    %245 = arith.mulf %240, %244 : vector<8x128xf32>
    %246 = vector.broadcast %137 : vector<8x1xf32> to vector<8x128xf32>
    %247 = arith.mulf %245, %246 : vector<8x128xf32>
    %248 = vector.broadcast %138 : vector<8x1xf32> to vector<8x128xf32>
    %249 = arith.addf %247, %248 : vector<8x128xf32>
    %c0_67 = arith.constant 0 : index
    %c0_68 = arith.constant 0 : index
    %250 = vector.load %arg2[%c0_67, %c0_68] : memref<16x18xf32, #tpu.memory_space<vmem>>, vector<16x18xf32>
    %c0_69 = arith.constant 0 : index
    %c0_70 = arith.constant 0 : index
    %251 = vector.load %arg11[%c0_69, %c0_70] : memref<1x50xf32, #tpu.memory_space<vmem>>, vector<1x32xf32>
    %c0_71 = arith.constant 0 : index
    %c32 = arith.constant 32 : index
    %252 = vector.load %arg11[%c0_71, %c32] : memref<1x50xf32, #tpu.memory_space<vmem>>, vector<1x18xf32>
    %c0_72 = arith.constant 0 : index
    %c0_73 = arith.constant 0 : index
    %253 = vector.load %arg9[%c0_72, %c0_73] : memref<18x32xbf16, #tpu.memory_space<vmem>>, vector<18x32xbf16>
    %254 = arith.truncf %250 : vector<16x18xf32> to vector<16x18xbf16>
    %cst_74 = arith.constant dense<0.000000e+00> : vector<16x32xf32>
    %255 = tpu.matmul %254, %253, %cst_74 {dimension_numbers = #tpu.dot_dimension_numbers<[1], [0], [0], [1], [0, 0, 1, 1], [], []>} : vector<16x18xbf16>, vector<18x32xbf16>, vector<16x32xf32> -> vector<16x32xf32>
    %256 = vector.broadcast %251 : vector<1x32xf32> to vector<16x32xf32>
    %257 = arith.addf %255, %256 : vector<16x32xf32>
    %cst_75 = arith.constant 0.000000e+00 : f32
    %258 = vector.broadcast %cst_75 : f32 to vector<16x32xf32>
    %259 = arith.maximumf %257, %258 : vector<16x32xf32>
    %c0_76 = arith.constant 0 : index
    %c0_77 = arith.constant 0 : index
    %260 = vector.load %arg10[%c0_76, %c0_77] : memref<32x18xbf16, #tpu.memory_space<vmem>>, vector<32x18xbf16>
    %261 = arith.truncf %259 : vector<16x32xf32> to vector<16x32xbf16>
    %cst_78 = arith.constant dense<0.000000e+00> : vector<16x18xf32>
    %262 = tpu.matmul %261, %260, %cst_78 {dimension_numbers = #tpu.dot_dimension_numbers<[1], [0], [0], [1], [0, 0, 1, 1], [], []>} : vector<16x32xbf16>, vector<32x18xbf16>, vector<16x18xf32> -> vector<16x18xf32>
    %263 = vector.broadcast %252 : vector<1x18xf32> to vector<16x18xf32>
    %264 = arith.addf %262, %263 : vector<16x18xf32>
    %cst_79 = arith.constant 0.000000e+00 : f32
    %265 = vector.broadcast %cst_79 : f32 to vector<16x18xf32>
    %266 = arith.maximumf %264, %265 : vector<16x18xf32>
    %c0_80 = arith.constant 0 : index
    %c0_81 = arith.constant 0 : index
    %267 = vector.load %arg12[%c0_80, %c0_81] : memref<1x19xf32, #tpu.memory_space<vmem>>, vector<1x18xf32>
    %c0_82 = arith.constant 0 : index
    %c18 = arith.constant 18 : index
    %268 = vector.load %arg12[%c0_82, %c18] : memref<1x19xf32, #tpu.memory_space<vmem>>, vector<1x1xf32>
    %269 = vector.broadcast %267 : vector<1x18xf32> to vector<16x18xf32>
    %270 = arith.mulf %266, %269 : vector<16x18xf32>
    %cst_83 = arith.constant dense<0.000000e+00> : vector<16xf32>
    %271 = vector.multi_reduction <add>, %270, %cst_83 [1] : vector<16x18xf32> to vector<16xf32>
    %272 = vector.shape_cast %271 : vector<16xf32> to vector<16x1xf32>
    %c0_84 = arith.constant 0 : index
    %c0_85 = arith.constant 0 : index
    %273 = vector.load %arg5[%c0_84, %c0_85] : memref<8x128xf32, #tpu.memory_space<vmem>>, vector<8x128xf32>
    %274 = arith.mulf %249, %273 : vector<8x128xf32>
    %cst_86 = arith.constant dense<0.000000e+00> : vector<128xf32>
    %275 = vector.multi_reduction <add>, %274, %cst_86 [0] : vector<8x128xf32> to vector<128xf32>
    %276 = vector.shape_cast %275 : vector<128xf32> to vector<1x128xf32>
    %c0_87 = arith.constant 0 : index
    %c0_88 = arith.constant 0 : index
    %277 = vector.load %arg4[%c0_87, %c0_88] : memref<16x128xf32, #tpu.memory_space<vmem>>, vector<16x128xf32>
    %278 = vector.broadcast %276 : vector<1x128xf32> to vector<16x128xf32>
    %279 = arith.mulf %277, %278 : vector<16x128xf32>
    %cst_89 = arith.constant dense<0.000000e+00> : vector<16xf32>
    %280 = vector.multi_reduction <add>, %279, %cst_89 [1] : vector<16x128xf32> to vector<16xf32>
    %281 = vector.shape_cast %280 : vector<16xf32> to vector<16x1xf32>
    %282 = arith.addf %281, %272 : vector<16x1xf32>
    %283 = vector.broadcast %268 : vector<1x1xf32> to vector<16x1xf32>
    %284 = arith.addf %282, %283 : vector<16x1xf32>
    %c0_90 = arith.constant 0 : index
    %c0_91 = arith.constant 0 : index
    %285 = vector.load %arg13[%c0_90, %c0_91] : memref<16x1xf32, #tpu.memory_space<vmem>>, vector<16x1xf32>
    tpu.vector_store %arg13[%c0_90, %c0_91], %284 {strides = array<i32>} : memref<16x1xf32, #tpu.memory_space<vmem>>, vector<16x1xf32>,
    return
  }
  func.func @transform_0(%arg0: i32) -> (i32, i32) {
    %c0_i32 = arith.constant 0 : i32
    %c0_i32_0 = arith.constant 0 : i32
    return %c0_i32, %arg0 : i32, i32
  }
  func.func @transform_1(%arg0: i32) -> (i32, i32) {
    %c0_i32 = arith.constant 0 : i32
    %c0_i32_0 = arith.constant 0 : i32
    return %arg0, %c0_i32 : i32, i32
  }
  func.func @transform_2(%arg0: i32) -> (i32, i32) {
    %c0_i32 = arith.constant 0 : i32
    %c0_i32_0 = arith.constant 0 : i32
    %c0_i32_1 = arith.constant 0 : i32
    return %c0_i32, %c0_i32_0 : i32, i32
  }
  func.func @transform_3(%arg0: i32) -> (i32, i32) {
    %c0_i32 = arith.constant 0 : i32
    %c0_i32_0 = arith.constant 0 : i32
    %c0_i32_1 = arith.constant 0 : i32
    return %c0_i32, %c0_i32_0 : i32, i32
  }
  func.func @transform_4(%arg0: i32) -> (i32, i32) {
    %c0_i32 = arith.constant 0 : i32
    %c0_i32_0 = arith.constant 0 : i32
    %c0_i32_1 = arith.constant 0 : i32
    return %c0_i32, %c0_i32_0 : i32, i32
  }
  func.func @transform_5(%arg0: i32) -> (i32, i32, i32) {
    %c0_i32 = arith.constant 0 : i32
    %c0_i32_0 = arith.constant 0 : i32
    %c0_i32_1 = arith.constant 0 : i32
    %c0_i32_2 = arith.constant 0 : i32
    return %c0_i32, %c0_i32_0, %c0_i32_1 : i32, i32, i32
  }
  func.func @transform_6(%arg0: i32) -> (i32, i32, i32) {
    %c0_i32 = arith.constant 0 : i32
    %c0_i32_0 = arith.constant 0 : i32
    %c0_i32_1 = arith.constant 0 : i32
    %c0_i32_2 = arith.constant 0 : i32
    return %c0_i32, %c0_i32_0, %c0_i32_1 : i32, i32, i32
  }
  func.func @transform_7(%arg0: i32) -> (i32, i32, i32) {
    %c0_i32 = arith.constant 0 : i32
    %c0_i32_0 = arith.constant 0 : i32
    %c0_i32_1 = arith.constant 0 : i32
    %c0_i32_2 = arith.constant 0 : i32
    return %c0_i32, %c0_i32_0, %c0_i32_1 : i32, i32, i32
  }
  func.func @transform_8(%arg0: i32) -> (i32, i32) {
    %c0_i32 = arith.constant 0 : i32
    %c0_i32_0 = arith.constant 0 : i32
    %c0_i32_1 = arith.constant 0 : i32
    return %c0_i32, %c0_i32_0 : i32, i32
  }
  func.func @transform_9(%arg0: i32) -> (i32, i32) {
    %c0_i32 = arith.constant 0 : i32
    %c0_i32_0 = arith.constant 0 : i32
    %c0_i32_1 = arith.constant 0 : i32
    return %c0_i32, %c0_i32_0 : i32, i32
  }
  func.func @transform_10(%arg0: i32) -> (i32, i32) {
    %c0_i32 = arith.constant 0 : i32
    %c0_i32_0 = arith.constant 0 : i32
    %c0_i32_1 = arith.constant 0 : i32
    return %c0_i32, %c0_i32_0 : i32, i32
  }
  func.func @transform_11(%arg0: i32) -> (i32, i32) {
    %c0_i32 = arith.constant 0 : i32
    %c0_i32_0 = arith.constant 0 : i32
    %c0_i32_1 = arith.constant 0 : i32
    return %c0_i32, %c0_i32_0 : i32, i32
  }
  func.func @transform_12(%arg0: i32) -> (i32, i32) {
    %c0_i32 = arith.constant 0 : i32
    %c0_i32_0 = arith.constant 0 : i32
    return %arg0, %c0_i32 : i32, i32
  }
}

</mosaic_0001>

<bundles_post_ra>
// kernel: tpu_custom_call.1
= control target key start
LH: loop header
LB: loop body
LE: loop exit
PB: predicated region body
PF: predicated region fallthrough
CT: control target
= control target key end

     0   :  { %vm110_vm0 = vcmask 1043456   ;;  %v2233_v1 = vmov 0   ;;  %vm103_vm1 = vcmask 64512   ;;  %vm199_vm2 = vcmask 1041408   ;;  %s2234_s29 = smov 124   ;;  %s3297_s0 = inlined_call_operand.vmem [shape: f32[8,128], index: 0, kind: input, shape index: {}]   ;;  %s3298_s7 = inlined_call_operand.vmem [shape: f32[2,88,1], index: 7, kind: input, shape index: {}]   ;;  %s3299_s5 = inlined_call_operand.vmem [shape: bf16[2,64,8], index: 5, kind: input, shape index: {}]   ;;  %s3300_s2 = inlined_call_operand.vmem [shape: f32[128,128], index: 2, kind: input, shape index: {}]   ;;  %s3301_s6 = inlined_call_operand.vmem [shape: bf16[2,8,32], index: 6, kind: input, shape index: {}]   ;;  %s3302_s8 = inlined_call_operand.vmem [shape: bf16[18,32], index: 8, kind: input, shape index: {}]   ;;  %s3303_s1 = inlined_call_operand.vmem [shape: f32[16,18], index: 1, kind: input, shape index: {}]   ;;  %s3304_s10 = inlined_call_operand.vmem [shape: f32[1,50], index: 10, kind: input, shape index: {}]   ;;  %s3305_s9 = inlined_call_operand.vmem [shape: bf16[32,18], index: 9, kind: input, shape index: {}]   ;;  %s3306_s11 = inlined_call_operand.vmem [shape: f32[1,19], index: 11, kind: input, shape index: {}]   ;;  %s3307_s4 = inlined_call_operand.vmem [shape: f32[8,128], index: 4, kind: input, shape index: {}]   ;;  %s3308_s3 = inlined_call_operand.vmem [shape: f32[16,128], index: 3, kind: input, shape index: {}]   ;;  %s3309_s12 = inlined_call_operand.vmem [shape: f32[16,1], index: 12, kind: output, shape index: {}]  }
   0x1   :  { %v42_v0 = vld [vmem:[%s3297_s0] sm:$0xff]  ;;  %1945 = vset.pattern.permute.xlu0 %v2233_v1  ;;  %1946 = vset.pattern.permute.xlu1 %v2233_v1  ;;  %v68_v4 = vld [vmem:[%s3298_s7 + $0x8] sm:$0xff]  ;;  %vm174_vm3 = vcmask 31744   ;;  %vm835_vm8 = vcmask 261120   ;;  %vm1721_vm15 = vcmask 1040384  }
   0x2   :  { %v67_v2 = vld [vmem:[%s3298_s7] sm:$0xff]  ;;  %v79_v3 = vpack.c.bf16 %v42_v0, %v42_v0  ;;  %1947 = vset.pattern.permute.xlu2 %v2233_v1  ;;  %87 = vperm.xlu1 %1946, %v68_v4   ;;  %v57_v0 = vld [vmem:[%s3300_s2 + $0x70] sm:$0xff]  ;;  %v2371_v4 = vld [vmem:[%s3300_s2 + $0x78] sm:$0xff] }
   0x3   :  { %82 = vperm.xlu0 %1945, %v67_v2   ;;  %v1929_v6 = vld [vmem:[%s3299_s5] sm:$0xff] }
   0x4   :  { %v112_v5 = vsel %vm110_vm0, %v79_v3, 0  ;;  %v55_v3 = vld [vmem:[%s3300_s2 + $0x60] sm:$0xff] }
   0x5   :  { %121 = vmatpush.bf16.msra.mxu2 %v112_v5 }
   0x8   :  { %1831 = vmatmul.msk.bf16.vlgmr.msra.gmra.mxu2 %vm103_vm1, %v1929_v6 }
  0x74   :  { %v88_v11 = vpop.permute.xlu1 %87 }
  0x75   :  { %v83_v7 = vpop.permute.xlu0 %82 }
  0x8b   :  { %v123_v8 = vpop.f32.mrf.mxu2 }
  0x8c   :  { %v124_v9 = vadd.f32 %v123_v8, %v83_v7 }
  0x8e   :  { %v132_v10 = vmul.f32 0.5, %v124_v9  ;;  %v56_v9 = vld [vmem:[%s3300_s2 + $0x68] sm:$0xff] }
  0x90   :  { %133 = vxpose.xlu0.b32.start.end [1/1] (short) %v132_v10, 128 }
  0x93   :  { %v125_v12 = vpop.f32.mrf.mxu2 }
  0x94   :  { %v126_v13 = vadd.f32 %v125_v12, %v88_v11 }
  0x96   :  { %v173_v14 = vpack.c.bf16 %v126_v13, %v126_v13 }
  0x98   :  { %v201_v15 = vsel %vm199_vm2, %v173_v14, 0  ;;  %v443_v16 = vrot.slane %v173_v14, 2 }
  0x99   :  { %210 = vmatpush.bf16.msra.mxu1 %v201_v15 }
  0x9a   :  { %v469_v17 = vsel %vm199_vm2, %v443_v16, 0 }
  0x9b   :  { %478 = vmatpush.bf16.msra.mxu3 %v469_v17 }
 0x134   :  { %v149_v18 = vpop.trf.xlu0 }
 0x13c   :  { %v150_v19 = vpop.trf.xlu0 }
 0x13d   :  { %v165_v20 = vpack.c.bf16 %v150_v19, %v149_v18 }
 0x13f   :  { %426 = vrot.lane.b32.xlu1 %v165_v20, %s2234_s29  ;;  %1833 = vmatmul.msk.bf16.vlgmr.msra.gmra.mxu1 %vm174_vm3, %v165_v20 }
 0x144   :  { %v151_v21 = vpop.trf.xlu0 }
 0x14c   :  { %v152_v22 = vpop.trf.xlu0 }
 0x14d   :  { %v166_v23 = vpack.c.bf16 %v152_v22, %v151_v21 }
 0x14f   :  { %428 = vrot.lane.b32.xlu2 %v166_v23, %s2234_s29  ;;  %1834 = vmatmul.msk.bf16.gmra.mxu1 %vm174_vm3, %v166_v23 }
 0x154   :  { %v153_v24 = vpop.trf.xlu0 }
 0x15c   :  { %v154_v25 = vpop.trf.xlu0 }
 0x15d   :  { %v167_v26 = vpack.c.bf16 %v154_v25, %v153_v24  ;;  %v53_v24 = vld [vmem:[%s3300_s2 + $0x50] sm:$0xff] }
 0x15f   :  { %430 = vrot.lane.b32.xlu2 %v167_v26, %s2234_s29  ;;  %1835 = vmatmul.msk.bf16.gmra.mxu1 %vm174_vm3, %v167_v26 }
 0x164   :  { %v155_v27 = vpop.trf.xlu0 }
 0x16c   :  { %v156_v28 = vpop.trf.xlu0 }
 0x16d   :  { %v168_v29 = vpack.c.bf16 %v156_v28, %v155_v27  ;;  %v54_v28 = vld [vmem:[%s3300_s2 + $0x58] sm:$0xff] }
 0x16f   :  { %432 = vrot.lane.b32.xlu1 %v168_v29, %s2234_s29  ;;  %1836 = vmatmul.msk.bf16.gmra.mxu1 %vm174_vm3, %v168_v29 }
 0x174   :  { %v157_v30 = vpop.trf.xlu0 }
 0x17c   :  { %v158_v31 = vpop.trf.xlu0 }
 0x17d   :  { %v169_v32 = vpack.c.bf16 %v158_v31, %v157_v30 }
 0x17f   :  { %434 = vrot.lane.b32.xlu2 %v169_v32, %s2234_s29  ;;  %1837 = vmatmul.msk.bf16.gmra.mxu1 %vm174_vm3, %v169_v32 }
 0x184   :  { %v159_v33 = vpop.trf.xlu0 }
 0x18c   :  { %v160_v34 = vpop.trf.xlu0 }
 0x18d   :  { %v170_v35 = vpack.c.bf16 %v160_v34, %v159_v33  ;;  %v51_v33 = vld [vmem:[%s3300_s2 + $0x40] sm:$0xff] }
 0x18f   :  { %436 = vrot.lane.b32.xlu1 %v170_v35, %s2234_s29  ;;  %1838 = vmatmul.msk.bf16.gmra.mxu1 %vm174_vm3, %v170_v35 }
 0x194   :  { %v161_v36 = vpop.trf.xlu0 }
 0x19c   :  { %v162_v37 = vpop.trf.xlu0 }
 0x19d   :  { %v171_v38 = vpack.c.bf16 %v162_v37, %v161_v36  ;;  %v52_v36 = vld [vmem:[%s3300_s2 + $0x48] sm:$0xff] }
 0x19f   :  { %1839 = vmatmul.msk.bf16.gmra.mxu1 %vm174_vm3, %v171_v38  ;;  %438 = vrot.lane.b32.xlu2 %v171_v38, %s2234_s29 }
 0x1a4   :  { %v163_v39 = vpop.trf.xlu0 }
 0x1a9   :  { %v429_v44 = vpop.permute.xlu2 %428 }
 0x1ac   :  { %v164_v40 = vpop.trf.xlu0 }
 0x1ad   :  { %v172_v41 = vpack.c.bf16 %v164_v40, %v163_v39  ;;  %v49_v39 = vld [vmem:[%s3300_s2 + $0x30] sm:$0xff] }
 0x1af   :  { %440 = vrot.lane.b32.xlu1 %v172_v41, %s2234_s29  ;;  %1840 = vmatmul.msk.bf16.gmra.mxu1 %vm174_vm3, %v172_v41 }
 0x1b1   :  { %v427_v42 = vpop.permute.xlu1 %426 }
 0x1b2   :  { %1841 = vmatmul.msk.bf16.vlgmr.msra.gmra.mxu3 %vm174_vm3, %v427_v42  ;;  %v50_v42 = vld [vmem:[%s3300_s2 + $0x38] sm:$0xff] }
 0x1b9   :  { %v431_v47 = vpop.permute.xlu2 %430 }
 0x1bc   :  { %v2336_v43 = vpop.f32.mrf.mxu1 }
 0x1c2   :  { %1842 = vmatmul.msk.bf16.gmra.mxu3 %vm174_vm3, %v429_v44 }
 0x1c4   :  { %v2339_v45 = vpop.f32.mrf.mxu1 }
 0x1cc   :  { %v2341_v46 = vpop.f32.mrf.mxu1 }
 0x1d2   :  { %1843 = vmatmul.msk.bf16.gmra.mxu3 %vm174_vm3, %v431_v47 }
 0x1d4   :  { %v2344_v48 = vpop.f32.mrf.mxu1 }
 0x1d9   :  { %v435_v53 = vpop.permute.xlu2 %434 }
 0x1dc   :  { %v2346_v49 = vpop.f32.mrf.mxu1 }
 0x1e1   :  { %v433_v50 = vpop.permute.xlu1 %432 }
 0x1e2   :  { %1844 = vmatmul.msk.bf16.gmra.mxu3 %vm174_vm3, %v433_v50  ;;  %v47_v50 = vld [vmem:[%s3300_s2 + $0x20] sm:$0xff] }
 0x1e4   :  { %v2349_v51 = vpop.f32.mrf.mxu1 }
 0x1ec   :  { %v2351_v52 = vpop.f32.mrf.mxu1 }
 0x1ed   :  { %v2442_v41 = vadd.f32 %v2351_v52, %v49_v39 }
 0x1f2   :  { %1845 = vmatmul.msk.bf16.gmra.mxu3 %vm174_vm3, %v435_v53  ;;  %v2462_v53 = vadd.f32 %v2346_v49, %v47_v50  ;;  %v45_v49 = vld [vmem:[%s3300_s2 + $0x10] sm:$0xff] }
 0x1f4   :  { %v2354_v54 = vpop.f32.mrf.mxu1 }
 0x1f5   :  { %v2450_v44 = vadd.f32 %v2354_v54, %v50_v42  ;;  %v48_v54 = vld [vmem:[%s3300_s2 + $0x28] sm:$0xff] }
 0x1f9   :  { %v439_v59 = vpop.permute.xlu2 %438 }
 0x1fc   :  { %v232_v55 = vpop.f32.mrf.mxu1 }
 0x1fd   :  { %v2423_v35 = vadd.f32 %v232_v55, %v51_v33  ;;  %v2470_v55 = vadd.f32 %v2349_v51, %v48_v54  ;;  %v46_v51 = vld [vmem:[%s3300_s2 + $0x18] sm:$0xff] }
 0x201   :  { %v437_v56 = vpop.permute.xlu1 %436 }
 0x202   :  { %1846 = vmatmul.msk.bf16.gmra.mxu3 %vm174_vm3, %v437_v56 }
 0x204   :  { %v234_v57 = vpop.f32.mrf.mxu1 }
 0x205   :  { %v2430_v37 = vadd.f32 %v234_v57, %v52_v36 }
 0x20c   :  { %v237_v58 = vpop.f32.mrf.mxu1 }
 0x20d   :  { %v2400_v26 = vadd.f32 %v237_v58, %v53_v24 }
 0x212   :  { %1847 = vmatmul.msk.bf16.gmra.mxu3 %vm174_vm3, %v439_v59  ;;  %v2482_v59 = vadd.f32 %v2341_v46, %v45_v49 }
 0x214   :  { %v239_v60 = vpop.f32.mrf.mxu1 }
 0x215   :  { %v2409_v30 = vadd.f32 %v239_v60, %v54_v28 }
 0x21c   :  { %v242_v61 = vpop.f32.mrf.mxu1 }
 0x21d   :  { %v2373_v6 = vadd.f32 %v242_v61, %v55_v3  ;;  %v2490_v61 = vadd.f32 %v2344_v48, %v46_v51 }
 0x221   :  { %v441_v62 = vpop.permute.xlu1 %440 }
 0x222   :  { %1848 = vmatmul.msk.bf16.gmra.mxu3 %vm174_vm3, %v441_v62 }
 0x224   :  { %v244_v63 = vpop.f32.mrf.mxu1 }
 0x225   :  { %v2385_v10 = vadd.f32 %v244_v63, %v56_v9 }
 0x22c   :  { %v247_v1 = vpop.f32.mrf.mxu1 }
 0x22d   :  { %v2362_v2 = vadd.f32 %v247_v1, %v57_v0 }
 0x22f   :  { %280 = vmax.xlane.f32.xlu2 %v2362_v2 }
 0x234   :  { %v249_v5 = vpop.f32.mrf.mxu1 }
 0x235   :  { %v2376_v7 = vadd.f32 %v249_v5, %v2371_v4  ;;  %v2378_v8 = vpop.f32.mrf.mxu3 }
 0x237   :  { %282 = vmax.xlane.f32.xlu1 %v2376_v7  ;;  %276 = vmax.xlane.f32.xlu2 %v2373_v6 }
 0x23d   :  { %v2387_v11 = vpop.f32.mrf.mxu3 }
 0x23f   :  { %278 = vmax.xlane.f32.xlu1 %v2385_v10 }
 0x245   :  { %v2390_v12 = vpop.f32.mrf.mxu3 }
 0x246   :  { %v2493_v62 = vadd.f32 %v2390_v12, %v45_v49 }
 0x24d   :  { %v2392_v13 = vpop.f32.mrf.mxu3 }
 0x24e   :  { %v2502_v5 = vadd.f32 %v2392_v13, %v46_v51 }
 0x255   :  { %v490_v14 = vpop.f32.mrf.mxu3 }
 0x256   :  { %v2472_v56 = vadd.f32 %v490_v14, %v47_v50 }
 0x25d   :  { %v492_v15 = vpop.f32.mrf.mxu3 }
 0x25e   :  { %v2479_v58 = vadd.f32 %v492_v15, %v48_v54 }
 0x265   :  { %v495_v16 = vpop.f32.mrf.mxu3 }
 0x266   :  { %v2452_v47 = vadd.f32 %v495_v16, %v49_v39 }
 0x26d   :  { %v497_v17 = vpop.f32.mrf.mxu3 }
 0x26e   :  { %v2459_v52 = vadd.f32 %v497_v17, %v50_v42 }
 0x275   :  { %v500_v18 = vpop.f32.mrf.mxu3 }
 0x276   :  { %v2432_v38 = vadd.f32 %v500_v18, %v51_v33 }
 0x27d   :  { %v502_v19 = vpop.f32.mrf.mxu3 }
 0x27e   :  { %v2439_v40 = vadd.f32 %v502_v19, %v52_v36 }
 0x285   :  { %v505_v20 = vpop.f32.mrf.mxu3 }
 0x286   :  { %v2413_v32 = vadd.f32 %v505_v20, %v53_v24 }
 0x28d   :  { %v507_v21 = vpop.f32.mrf.mxu3 }
 0x28e   :  { %v2421_v34 = vadd.f32 %v507_v21, %v54_v28 }
 0x295   :  { %v510_v22 = vpop.f32.mrf.mxu3 }
 0x296   :  { %v2394_v23 = vadd.f32 %v510_v22, %v55_v3 }
 0x298   :  { %544 = vmax.xlane.f32.xlu2 %v2394_v23 }
 0x29d   :  { %v512_v25 = vpop.f32.mrf.mxu3 }
 0x29e   :  { %v2402_v27 = vadd.f32 %v512_v25, %v56_v9 }
 0x2a0   :  { %546 = vmax.xlane.f32.xlu1 %v2402_v27  ;;  %272 = vmax.xlane.f32.xlu2 %v2400_v26 }
 0x2a2   :  { %v281_v57 = vpop.xlane.xlu2 %280 }
 0x2a5   :  { %v515_v29 = vpop.f32.mrf.mxu3 }
 0x2a6   :  { %v2411_v31 = vadd.f32 %v515_v29, %v57_v0  ;;  %v43_v0 = vld [vmem:[%s3300_s2] sm:$0xff] }
 0x2a7   :  { %v2505_v48 = vadd.f32 %v2336_v43, %v43_v0 }
 0x2a8   :  { %548 = vmax.xlane.f32.xlu0 %v2411_v31  ;;  %274 = vmax.xlane.f32.xlu1 %v2409_v30 }
 0x2a9   :  { %540 = vmax.xlane.f32.xlu2 %v2413_v32 }
 0x2aa   :  { %v283_v60 = vpop.xlane.xlu1 %282  ;;  %v277_v63 = vpop.xlane.xlu2 %276 }
 0x2ab   :  { %v296_v46 = vsub.f32 %v2373_v6, %v277_v63  ;;  %v44_v6 = vld [vmem:[%s3300_s2 + $0x8] sm:$0xff]  ;;  %v299_v49 = vsub.f32 %v2376_v7, %v283_v60 }
 0x2ac   :  { %v2514_v14 = vadd.f32 %v2339_v45, %v44_v6  ;;  %v2528_v15 = vadd.f32 %v2387_v11, %v44_v6 }
 0x2ad   :  { %v324_v1 = vmul.f32 1.442695, %v296_v46  ;;  %v330_v51 = vmul.f32 1.442695, %v299_v49  ;;  %v517_v60 = vpop.f32.mrf.mxu3 }
 0x2ae   :  { %v2563_v6 = vadd.f32 %v517_v60, %v2371_v4 }
 0x2af   :  { %1950 = vpow2.f32 %v324_v1 }
 0x2b0   :  { %542 = vmax.xlane.f32.xlu1 %v2421_v34 }
 0x2b1   :  { %268 = vmax.xlane.f32.xlu2 %v2423_v35 }
 0x2b2   :  { %v279_v3 = vpop.xlane.xlu1 %278 }
 0x2b3   :  { %v297_v9 = vsub.f32 %v2385_v10, %v279_v3  ;;  %v2523_v10 = vadd.f32 %v2378_v8, %v43_v0 }
 0x2b5   :  { %v326_v12 = vmul.f32 1.442695, %v297_v9  ;;  %v2516_v13 = vpop.eup %1950 }
 0x2b7   :  { %1952 = vpow2.f32 %v326_v12 }
 0x2b8   :  { %270 = vmax.xlane.f32.xlu1 %v2430_v37 }
 0x2b9   :  { %536 = vmax.xlane.f32.xlu2 %v2432_v38 }
 0x2bd   :  { %v2520_v43 = vpop.eup %1952 }
 0x2c0   :  { %538 = vmax.xlane.f32.xlu1 %v2439_v40 }
 0x2c1   :  { %264 = vmax.xlane.f32.xlu2 %v2442_v41 }
 0x2c8   :  { %266 = vmax.xlane.f32.xlu1 %v2450_v44 }
 0x2c9   :  { %532 = vmax.xlane.f32.xlu2 %v2452_v47 }
 0x2d0   :  { %534 = vmax.xlane.f32.xlu1 %v2459_v52 }
 0x2d1   :  { %260 = vmax.xlane.f32.xlu2 %v2462_v53 }
 0x2d8   :  { %262 = vmax.xlane.f32.xlu1 %v2470_v55 }
 0x2d9   :  { %528 = vmax.xlane.f32.xlu2 %v2472_v56 }
 0x2e0   :  { %530 = vmax.xlane.f32.xlu1 %v2479_v58 }
 0x2e1   :  { %256 = vmax.xlane.f32.xlu2 %v2482_v59 }
 0x2e8   :  { %258 = vmax.xlane.f32.xlu1 %v2490_v61 }
 0x2e9   :  { %524 = vmax.xlane.f32.xlu2 %v2493_v62 }
 0x2f0   :  { %526 = vmax.xlane.f32.xlu1 %v2502_v5 }
 0x2f1   :  { %252 = vmax.xlane.f32.xlu2 %v2505_v48 }
 0x2f8   :  { %254 = vmax.xlane.f32.xlu1 %v2514_v14 }
 0x2f9   :  { %356 = vadd.xlane.f32.xlu2 %v2516_v13 }
 0x300   :  { %358 = vadd.xlane.f32.xlu1 %v2520_v43 }
 0x301   :  { %520 = vmax.xlane.f32.xlu2 %v2523_v10 }
 0x308   :  { %522 = vmax.xlane.f32.xlu1 %v2528_v15 }
 0x30b   :  { %v2531_v45 = vpop.xlane.xlu2 %544 }
 0x30c   :  { %v564_v4 = vsub.f32 %v2394_v23, %v2531_v45 }
 0x313   :  { %v547_v16 = vpop.xlane.xlu1 %546  ;;  %v273_v17 = vpop.xlane.xlu2 %272 }
 0x314   :  { %v294_v18 = vsub.f32 %v2400_v26, %v273_v17  ;;  %v298_v26 = vsub.f32 %v2362_v2, %v281_v57  ;;  %v565_v12 = vsub.f32 %v2402_v27, %v547_v16 }
 0x316   :  { %v320_v19 = vmul.f32 1.442695, %v294_v18  ;;  %v328_v42 = vmul.f32 1.442695, %v298_v26  ;;  %v594_v17 = vmul.f32 1.442695, %v565_v12 }
 0x318   :  { %1954 = vpow2.f32 %v320_v19 }
 0x31b   :  { %v275_v20 = vpop.xlane.xlu1 %274 }
 0x31c   :  { %v295_v8 = vsub.f32 %v2409_v30, %v275_v20  ;;  %v541_v21 = vpop.xlane.xlu2 %540 }
 0x31e   :  { %v322_v22 = vmul.f32 1.442695, %v295_v8  ;;  %v2535_v24 = vpop.eup %1954 }
 0x31f   :  { %352 = vadd.xlane.f32.xlu2 %v2535_v24 }
 0x320   :  { %1956 = vpow2.f32 %v322_v22 }
 0x323   :  { %v543_v11 = vpop.xlane.xlu1 %542 }
 0x324   :  { %v269_v25 = vpop.xlane.xlu2 %268 }
 0x325   :  { %v292_v28 = vsub.f32 %v2423_v35, %v269_v25 }
 0x326   :  { %v2539_v29 = vpop.eup %1956 }
 0x327   :  { %v316_v33 = vmul.f32 1.442695, %v292_v28  ;;  %354 = vadd.xlane.f32.xlu1 %v2539_v29 }
 0x329   :  { %1958 = vpow2.f32 %v316_v33 }
 0x32b   :  { %v271_v30 = vpop.xlane.xlu1 %270 }
 0x32c   :  { %v293_v36 = vsub.f32 %v2430_v37, %v271_v30  ;;  %v537_v39 = vpop.xlane.xlu2 %536  ;;  %v563_v37 = vsub.f32 %v2421_v34, %v543_v11  ;;  %v562_v34 = vsub.f32 %v2413_v32, %v541_v21  ;;  %v592_v32 = vmul.f32 1.442695, %v564_v4  ;;  %v549_v11 = vpop.xlane.xlu0 %548 }
 0x32d   :  { %v560_v7 = vsub.f32 %v2432_v38, %v537_v39  ;;  %v566_v23 = vsub.f32 %v2411_v31, %v549_v11 }
 0x32e   :  { %v318_v50 = vmul.f32 1.442695, %v293_v36  ;;  %v590_v0 = vmul.f32 1.442695, %v563_v37  ;;  %v588_v19 = vmul.f32 1.442695, %v562_v34 }
 0x32f   :  { %v2544_v54 = vpop.eup %1958  ;;  %v584_v3 = vmul.f32 1.442695, %v560_v7  ;;  %v596_v26 = vmul.f32 1.442695, %v566_v23 }
 0x330   :  { %1960 = vpow2.f32 %v318_v50  ;;  %348 = vadd.xlane.f32.xlu2 %v2544_v54 }
 0x331   :  { %1962 = vpow2.f32 %v328_v42 }
 0x332   :  { %1964 = vpow2.f32 %v330_v51 }
 0x333   :  { %v2548_v35 = vpop.xlane.xlu1 %538  ;;  %1966 = vpow2.f32 %v590_v0 }
 0x334   :  { %v265_v63 = vpop.xlane.xlu2 %264  ;;  %1968 = vpow2.f32 %v584_v3 }
 0x335   :  { %1970 = vpow2.f32 %v594_v17  ;;  %v290_v36 = vsub.f32 %v2442_v41, %v265_v63 }
 0x336   :  { %v2550_v2 = vpop.eup %1960  ;;  %1972 = vpow2.f32 %v588_v19 }
 0x337   :  { %v2552_v57 = vpop.eup %1962  ;;  %350 = vadd.xlane.f32.xlu1 %v2550_v2  ;;  %1974 = vpow2.f32 %v592_v32  ;;  %v312_v50 = vmul.f32 1.442695, %v290_v36 }
 0x338   :  { %360 = vadd.xlane.f32.xlu2 %v2552_v57  ;;  %v2560_v9 = vpop.eup %1964 }
 0x339   :  { %v2571_v20 = vpop.eup %1966 }
 0x33a   :  { %v2573_v8 = vpop.eup %1968 }
 0x33b   :  { %v2558_v46 = vpop.xlane.xlu1 %266  ;;  %v2582_v22 = vpop.eup %1970 }
 0x33c   :  { %v533_v1 = vpop.xlane.xlu2 %532  ;;  %v2584_v25 = vpop.eup %1972 }
 0x33d   :  { %v2591_v30 = vpop.eup %1974  ;;  %v558_v37 = vsub.f32 %v2452_v47, %v533_v1 }
 0x33f   :  { %362 = vadd.xlane.f32.xlu1 %v2560_v9  ;;  %v580_v60 = vmul.f32 1.442695, %v558_v37 }
 0x340   :  { %550 = vmax.xlane.f32.xlu2 %v2563_v6 }
 0x343   :  { %v2569_v38 = vpop.xlane.xlu1 %534 }
 0x344   :  { %v261_v18 = vpop.xlane.xlu2 %260 }
 0x345   :  { %v288_v47 = vsub.f32 %v2462_v53, %v261_v18 }
 0x347   :  { %622 = vadd.xlane.f32.xlu1 %v2571_v20  ;;  %v308_v12 = vmul.f32 1.442695, %v288_v47 }
 0x348   :  { %616 = vadd.xlane.f32.xlu2 %v2573_v8 }
 0x34b   :  { %v2579_v27 = vpop.xlane.xlu1 %262 }
 0x34c   :  { %v529_v16 = vpop.xlane.xlu2 %528 }
 0x34d   :  { %v556_v21 = vsub.f32 %v2472_v56, %v529_v16 }
 0x34f   :  { %v576_v28 = vmul.f32 1.442695, %v556_v21  ;;  %626 = vadd.xlane.f32.xlu1 %v2582_v22 }
 0x350   :  { %620 = vadd.xlane.f32.xlu2 %v2584_v25 }
 0x351   :  { %1976 = vpow2.f32 %v576_v28 }
 0x352   :  { %1978 = vpow2.f32 %v596_v26 }
 0x353   :  { %v531_v45 = vpop.xlane.xlu1 %530 }
 0x354   :  { %v2589_v33 = vpop.xlane.xlu2 %256 }
 0x357   :  { %v2593_v56 = vpop.eup %1976 }
 0x358   :  { %624 = vadd.xlane.f32.xlu2 %v2591_v30  ;;  %608 = vadd.xlane.f32.xlu0 %v2593_v56  ;;  %v2599_v51 = vpop.eup %1978 }
 0x35b   :  { %v259_v39 = vpop.xlane.xlu1 %258 }
 0x35c   :  { %v287_v42 = vsub.f32 %v2490_v61, %v259_v39  ;;  %v525_v31 = vpop.xlane.xlu2 %524 }
 0x35d   :  { %v554_v53 = vsub.f32 %v2493_v62, %v525_v31 }
 0x35e   :  { %v306_v49 = vmul.f32 1.442695, %v287_v42  ;;  %v72_v42 = vld [vmem:[%s3298_s7 + $0x28] sm:$0xff] }
 0x35f   :  { %v572_v21 = vmul.f32 1.442695, %v554_v53 }
 0x360   :  { %1980 = vpow2.f32 %v306_v49  ;;  %628 = vadd.xlane.f32.xlu2 %v2599_v51  ;;  %v73_v49 = vld [vmem:[%s3298_s7 + $0x30] sm:$0xff] }
 0x361   :  { %1982 = vpow2.f32 %v312_v50 }
 0x362   :  { %1984 = vpow2.f32 %v580_v60 }
 0x363   :  { %v2603_v7 = vpop.xlane.xlu1 %526 }
 0x364   :  { %v253_v0 = vpop.xlane.xlu2 %252 }
 0x365   :  { %v284_v41 = vsub.f32 %v2505_v48, %v253_v0  ;;  %v557_v48 = vsub.f32 %v2479_v58, %v531_v45  ;;  %v1869_v0 = vld [vmem:[%s3298_s7 + $0x58] sm:$0xff] }
 0x366   :  { %v2606_v63 = vpop.eup %1980 }
 0x367   :  { %v2608_v61 = vpop.eup %1982  ;;  %v300_v3 = vmul.f32 1.442695, %v284_v41  ;;  %338 = vadd.xlane.f32.xlu0 %v2606_v63  ;;  %v578_v4 = vmul.f32 1.442695, %v557_v48  ;;  %v561_v48 = vsub.f32 %v2439_v40, %v2548_v35  ;;  %v291_v40 = vsub.f32 %v2450_v44, %v2558_v46 }
 0x368   :  { %344 = vadd.xlane.f32.xlu2 %v2608_v61  ;;  %v2613_v34 = vpop.eup %1984  ;;  %v559_v44 = vsub.f32 %v2459_v52, %v2569_v38  ;;  %v289_v52 = vsub.f32 %v2470_v55, %v2579_v27  ;;  %v69_v55 = vld [vmem:[%s3298_s7 + $0x10] sm:$0xff] }
 0x369   :  { %1986 = vpow2.f32 %v300_v3 }
 0x36a   :  { %1988 = vpow2.f32 %v308_v12 }
 0x36b   :  { %v255_v1 = vpop.xlane.xlu1 %254  ;;  %1990 = vpow2.f32 %v578_v4 }
 0x36c   :  { %v285_v58 = vsub.f32 %v2514_v14, %v255_v1  ;;  %v357_v62 = vpop.xlane.xlu2 %356  ;;  %v71_v14 = vld [vmem:[%s3298_s7 + $0x20] sm:$0xff] }
 0x36e   :  { %v302_v23 = vmul.f32 1.442695, %v285_v58 }
 0x36f   :  { %v2615_v17 = vpop.eup %1986 }
 0x370   :  { %612 = vadd.xlane.f32.xlu2 %v2613_v34  ;;  %332 = vadd.xlane.f32.xlu0 %v2615_v17  ;;  %v2620_v32 = vpop.eup %1988 }
 0x371   :  { %v2625_v28 = vpop.eup %1990 }
 0x373   :  { %v359_v19 = vpop.xlane.xlu1 %358 }
 0x374   :  { %v2638_v36 = vpop.xlane.xlu2 %520 }
 0x378   :  { %340 = vadd.xlane.f32.xlu2 %v2620_v32 }
 0x37b   :  { %v523_v18 = vpop.xlane.xlu1 %522 }
 0x37c   :  { %v553_v16 = vsub.f32 %v2528_v15, %v523_v18 }
 0x37e   :  { %v570_v11 = vmul.f32 1.442695, %v553_v16  ;;  %v586_v16 = vmul.f32 1.442695, %v561_v48 }
 0x380   :  { %1992 = vpow2.f32 %v570_v11  ;;  %610 = vadd.xlane.f32.xlu2 %v2625_v28 }
 0x381   :  { %1994 = vpow2.f32 %v572_v21 }
 0x382   :  { %1996 = vpow2.f32 %v302_v23 }
 0x386   :  { %v2629_v45 = vpop.eup %1992 }
 0x387   :  { %v2631_v26 = vpop.eup %1994  ;;  %602 = vadd.xlane.f32.xlu0 %v2629_v45 }
 0x388   :  { %604 = vadd.xlane.f32.xlu2 %v2631_v26  ;;  %v2635_v15 = vpop.eup %1996 }
 0x390   :  { %334 = vadd.xlane.f32.xlu2 %v2635_v15 }
 0x392   :  { %v353_v39 = vpop.xlane.xlu2 %352 }
 0x39a   :  { %v355_v31 = vpop.xlane.xlu1 %354 }
 0x39b   :  { %755 = vperm.xlu0 %1945, %v71_v14  }
 0x3a3   :  { %v349_v50 = vpop.xlane.xlu2 %348  ;;  %761 = vperm.xlu0 %1945, %v72_v42  }
 0x3a8   :  { %92 = vperm.xlu2 %1947, %v69_v55  }
 0x3aa   :  { %v351_v37 = vpop.xlane.xlu1 %350 }
 0x3ab   :  { %v361_v60 = vpop.xlane.xlu2 %360  ;;  %768 = vperm.xlu0 %1945, %v73_v49  }
 0x3ac   :  { %1998 = vrcp.f32 %v361_v60 }
 0x3b2   :  { %v363_v41 = vpop.xlane.xlu1 %362  ;;  %v1999_v12 = vpop.eup %1998 }
 0x3b3   :  { %2000 = vrcp.f32 %v363_v41  ;;  %v551_v3 = vpop.xlane.xlu2 %550  ;;  %909 = vperm.xlu0 %1945, %v1869_v0   ;;  %v394_v53 = vmul.f32 %v1999_v12, %v2552_v57 }
 0x3b4   :  { %v567_v47 = vsub.f32 %v2563_v6, %v551_v3  ;;  %2002 = vrcp.f32 %v359_v19  ;;  %v286_v3 = vsub.f32 %v2482_v59, %v2589_v33  ;;  %v552_v33 = vsub.f32 %v2523_v10, %v2638_v36 }
 0x3b6   :  { %v598_v1 = vmul.f32 1.442695, %v567_v47  ;;  %v304_v47 = vmul.f32 1.442695, %v286_v3  ;;  %v568_v12 = vmul.f32 1.442695, %v552_v33 }
 0x3b8   :  { %2004 = vpow2.f32 %v598_v1  ;;  %v75_v1 = vld [vmem:[%s3298_s7 + $0x40] sm:$0xff] }
 0x3b9   :  { %v2001_v4 = vpop.eup %2000  ;;  %2006 = vrcp.f32 %v357_v62  ;;  %v61_v62 = vld [vmem:[%s3299_s5 + $0x8] sm:$0xf]  ;;  %778 = vperm.xlu2 %1947, %v75_v1  }
 0x3ba   :  { %v395_v18 = vmul.f32 %v2001_v4, %v2560_v9  ;;  %v2003_v11 = vpop.eup %2002  ;;  %2008 = vrcp.f32 %v355_v31  ;;  %v314_v9 = vmul.f32 1.442695, %v291_v40  ;;  %v100_v42 = vunpack.c.l.b16 %v61_v62  ;;  %v1870_v4 = vld [vmem:[%s3298_s7 + $0x60] sm:$0xff] }
 0x3bb   :  { %2010 = vpow2.f32 %v586_v16  ;;  %v393_v35 = vmul.f32 %v2003_v11, %v2520_v43  ;;  %v617_v10 = vpop.xlane.xlu2 %616  ;;  %v623_v11 = vpop.xlane.xlu1 %622 }
 0x3bc   :  { %v404_v21 = vpack.c.bf16 %v395_v18, %v394_v53  ;;  %2012 = vrcp.f32 %v353_v39  ;;  %v102_v43 = vpack.c.b16 %v100_v42, %v100_v42  ;;  %v582_v39 = vmul.f32 1.442695, %v559_v44  ;;  %v70_v53 = vld [vmem:[%s3298_s7 + $0x18] sm:$0xff]  ;;  %v76_v18 = vld [vmem:[%s3298_s7 + $0x48] sm:$0xff] }
 0x3bd   :  { %2014 = vrcp.f32 %v351_v37 }
 0x3be   :  { %v2657_v58 = vpop.eup %2004  ;;  %405 = vmatpush.bf16.xpose.msrb.mxu2 %v404_v21  ;;  %2016 = vpow2.f32 %v314_v9  ;;  %v77_v21 = vld [vmem:[%s3298_s7 + $0x50] sm:$0xff] }
 0x3bf   :  { %v2007_v6 = vpop.eup %2006  ;;  %630 = vadd.xlane.f32.xlu1 %v2657_v58  ;;  %2018 = vrcp.f32 %v349_v50  ;;  %1832 = vmatmul.msk.bf16.gmra.mxu2 %vm103_vm1, %v102_v43 }
 0x3c0   :  { %v392_v57 = vmul.f32 %v2007_v6, %v2516_v13  ;;  %v2009_v23 = vpop.eup %2008  ;;  %2020 = vpow2.f32 %v582_v39 }
 0x3c1   :  { %v2667_v14 = vpop.eup %2010  ;;  %v391_v13 = vmul.f32 %v2009_v23, %v2539_v29 }
 0x3c2   :  { %v403_v19 = vpack.c.bf16 %v393_v35, %v392_v57  ;;  %v2013_v31 = vpop.eup %2012 }
 0x3c3   :  { %v390_v46 = vmul.f32 %v2013_v31, %v2535_v24  ;;  %v2015_v60 = vpop.eup %2014  ;;  %v310_v24 = vmul.f32 1.442695, %v289_v52  ;;  %v621_v36 = vpop.xlane.xlu2 %620 }
 0x3c4   :  { %v2675_v0 = vpop.eup %2016  ;;  %v389_v29 = vmul.f32 %v2015_v60, %v2550_v2  ;;  %v627_v40 = vpop.xlane.xlu1 %626 }
 0x3c5   :  { %v402_v49 = vpack.c.bf16 %v391_v13, %v390_v46  ;;  %v2019_v37 = vpop.eup %2018  ;;  %2022 = vpow2.f32 %v310_v24 }
 0x3c6   :  { %406 = vmatpush.bf16.xpose.msrb.mxu2 %v403_v19  ;;  %v388_v38 = vmul.f32 %v2019_v37, %v2544_v54  ;;  %v2682_v41 = vpop.eup %2020  ;;  %2024 = vpow2.f32 %v304_v47  ;;  %v555_v54 = vsub.f32 %v2502_v5, %v2603_v7  ;;  %v74_v5 = vld [vmem:[%s3298_s7 + $0x38] sm:$0xff] }
 0x3c7   :  { %618 = vadd.xlane.f32.xlu1 %v2667_v14  ;;  %773 = vperm.xlu2 %1947, %v74_v5  }
 0x3c8   :  { %v401_v50 = vpack.c.bf16 %v389_v29, %v388_v38  ;;  %v574_v27 = vmul.f32 1.442695, %v555_v54 }
 0x3ca   :  { %2026 = vpow2.f32 %v574_v27 }
 0x3cb   :  { %v2690_v2 = vpop.eup %2022  ;;  %2028 = vpow2.f32 %v568_v12  ;;  %v625_v16 = vpop.xlane.xlu2 %624 }
 0x3cc   :  { %v2698_v59 = vpop.eup %2024 }
 0x3ce   :  { %407 = vmatpush.bf16.xpose.msrb.mxu2 %v402_v49 }
 0x3cf   :  { %346 = vadd.xlane.f32.xlu1 %v2675_v0  ;;  %914 = vperm.xlu2 %1947, %v1870_v4  }
 0x3d0   :  { %v2703_v48 = vpop.eup %2026 }
 0x3d1   :  { %v2709_v7 = vpop.eup %2028 }
 0x3d3   :  { %v629_v6 = vpop.xlane.xlu2 %628 }
 0x3d4   :  { %2030 = vrcp.f32 %v629_v6 }
 0x3d6   :  { %408 = vmatpush.bf16.xpose.msrb.mxu2 %v401_v50 }
 0x3d7   :  { %614 = vadd.xlane.f32.xlu1 %v2682_v41 }
 0x3da   :  { %v2031_v19 = vpop.eup %2030 }
 0x3db   :  { %v345_v35 = vpop.xlane.xlu2 %344  ;;  %v662_v42 = vmul.f32 %v2031_v19, %v2599_v51 }
 0x3df   :  { %342 = vadd.xlane.f32.xlu1 %v2690_v2 }
 0x3e3   :  { %v613_v9 = vpop.xlane.xlu2 %612 }
 0x3e7   :  { %336 = vadd.xlane.f32.xlu1 %v2698_v59 }
 0x3eb   :  { %v341_v43 = vpop.xlane.xlu2 %340 }
 0x3ef   :  { %606 = vadd.xlane.f32.xlu1 %v2703_v48 }
 0x3f7   :  { %600 = vadd.xlane.f32.xlu1 %v2709_v7 }
 0x410   :  { %695 = vperm.xlu1 %1946, %v70_v53  }
 0x418   :  { %783 = vperm.xlu1 %1946, %v76_v18  }
 0x420   :  { %832 = vperm.xlu1 %1946, %v77_v21  }
 0x432   :  { %v631_v57 = vpop.xlane.xlu1 %630 }
 0x433   :  { %2032 = vrcp.f32 %v631_v57 }
 0x434   :  { %2034 = vrcp.f32 %v625_v16 }
 0x435   :  { %2036 = vrcp.f32 %v627_v40 }
 0x436   :  { %2038 = vrcp.f32 %v621_v36 }
 0x437   :  { %2040 = vrcp.f32 %v623_v11 }
 0x438   :  { %2042 = vrcp.f32 %v345_v35 }
 0x439   :  { %v2033_v23 = vpop.eup %2032 }
 0x43a   :  { %v619_v62 = vpop.xlane.xlu1 %618  ;;  %v663_v31 = vmul.f32 %v2033_v23, %v2657_v58  ;;  %v2035_v13 = vpop.eup %2034 }
 0x43b   :  { %v2037_v46 = vpop.eup %2036  ;;  %v660_v39 = vmul.f32 %v2035_v13, %v2591_v30  ;;  %v611_v58 = vpop.xlane.xlu2 %610 }
 0x43c   :  { %v671_v44 = vpack.c.bf16 %v663_v31, %v662_v42  ;;  %v661_v60 = vmul.f32 %v2037_v46, %v2582_v22  ;;  %v2039_v52 = vpop.eup %2038  ;;  %v609_v22 = vpop.xlane.xlu0 %608 }
 0x43d   :  { %v2041_v29 = vpop.eup %2040  ;;  %v658_v38 = vmul.f32 %v2039_v52, %v2584_v25 }
 0x43e   :  { %675 = vmatpush.bf16.xpose.msra.mxu0 %v671_v44  ;;  %v670_v37 = vpack.c.bf16 %v661_v60, %v660_v39  ;;  %v2043_v51 = vpop.eup %2042  ;;  %v659_v47 = vmul.f32 %v2041_v29, %v2571_v20 }
 0x43f   :  { %v386_v3 = vmul.f32 %v2043_v51, %v2608_v61 }
 0x440   :  { %v669_v54 = vpack.c.bf16 %v659_v47, %v658_v38 }
 0x442   :  { %v347_v49 = vpop.xlane.xlu1 %346  ;;  %v2732_v1 = vpop.f32.mrf.mxu2 }
 0x443   :  { %2044 = vrcp.f32 %v347_v49  ;;  %v605_v12 = vpop.xlane.xlu2 %604 }
 0x444   :  { %2046 = vrcp.f32 %v619_v62  ;;  %v339_v5 = vpop.xlane.xlu0 %338 }
 0x445   :  { %2048 = vrcp.f32 %v617_v10 }
 0x446   :  { %676 = vmatpush.bf16.xpose.msra.mxu0 %v670_v37 }
 0x449   :  { %v2045_v24 = vpop.eup %2044 }
 0x44a   :  { %v615_v50 = vpop.xlane.xlu1 %614  ;;  %v387_v30 = vmul.f32 %v2045_v24, %v2675_v0  ;;  %v2047_v27 = vpop.eup %2046 }
 0x44b   :  { %v2049_v33 = vpop.eup %2048  ;;  %2050 = vrcp.f32 %v615_v50  ;;  %v657_v25 = vmul.f32 %v2047_v27, %v2667_v14  ;;  %v130_v10 = vpop.f32.mrf.mxu2  ;;  %v2235_v27 = vmov 8.0  }
 0x44c   :  { %v400_v55 = vpack.c.bf16 %v387_v30, %v386_v3  ;;  %2052 = vrcp.f32 %v613_v9  ;;  %v656_v0 = vmul.f32 %v2049_v33, %v2573_v8  ;;  %v335_v6 = vpop.xlane.xlu2 %334  ;;  %v333_v9 = vpop.xlane.xlu0 %332 }
 0x44d   :  { %2054 = vrcp.f32 %v341_v43 }
 0x44e   :  { %409 = vmatpush.bf16.xpose.msrb.mxu2 %v400_v55  ;;  %677 = vmatpush.bf16.xpose.msra.mxu0 %v669_v54  ;;  %v668_v20 = vpack.c.bf16 %v657_v25, %v656_v0 }
 0x451   :  { %v2051_v4 = vpop.eup %2050 }
 0x452   :  { %v343_v61 = vpop.xlane.xlu1 %342  ;;  %v2053_v36 = vpop.eup %2052  ;;  %v655_v18 = vmul.f32 %v2051_v4, %v2682_v41 }
 0x453   :  { %2056 = vrcp.f32 %v343_v61  ;;  %v2055_v53 = vpop.eup %2054  ;;  %v654_v8 = vmul.f32 %v2053_v36, %v2613_v34 }
 0x454   :  { %2058 = vrcp.f32 %v611_v58  ;;  %v384_v21 = vmul.f32 %v2055_v53, %v2620_v32  ;;  %v603_v46 = vpop.xlane.xlu0 %602  ;;  %v93_v37 = vpop.permute.xlu2 %92 }
 0x455   :  { %2060 = vrcp.f32 %v609_v22  ;;  %v667_v35 = vpack.c.bf16 %v655_v18, %v654_v8  ;;  %v129_v51 = vadd.f32 %v2732_v1, %v93_v37  ;;  %v1930_v37 = vld [vmem:[%s3299_s5 + $0x10] sm:$0xff] }
 0x456   :  { %678 = vmatpush.bf16.xpose.msra.mxu0 %v668_v20  ;;  %2062 = vrcp.f32 %v339_v5  ;;  %v2216_v5 = vld [vmem:[%s3297_s0] sm:$0xff] }
 0x459   :  { %v2057_v16 = vpop.eup %2056 }
 0x45a   :  { %v337_v14 = vpop.xlane.xlu1 %336  ;;  %v385_v11 = vmul.f32 %v2057_v16, %v2690_v2  ;;  %v2059_v57 = vpop.eup %2058 }
 0x45b   :  { %2064 = vrcp.f32 %v337_v14  ;;  %v2061_v19 = vpop.eup %2060  ;;  %v653_v41 = vmul.f32 %v2059_v57, %v2625_v28 }
 0x45c   :  { %v399_v40 = vpack.c.bf16 %v385_v11, %v384_v21  ;;  %v2063_v23 = vpop.eup %2062  ;;  %2066 = vrcp.f32 %v335_v6  ;;  %v652_v42 = vmul.f32 %v2061_v19, %v2593_v56 }
 0x45d   :  { %2068 = vrcp.f32 %v333_v9  ;;  %v383_v34 = vmul.f32 %v2063_v23, %v2606_v63 }
 0x45e   :  { %410 = vmatpush.bf16.xpose.msrb.mxu2 %v399_v40  ;;  %679 = vmatpush.bf16.xpose.msra.mxu0 %v667_v35  ;;  %2070 = vrcp.f32 %v605_v12  ;;  %v666_v44 = vpack.c.bf16 %v653_v41, %v652_v42 }
 0x461   :  { %v2065_v62 = vpop.eup %2064 }
 0x462   :  { %v607_v32 = vpop.xlane.xlu1 %606  ;;  %v382_v2 = vmul.f32 %v2065_v62, %v2698_v59  ;;  %v2067_v13 = vpop.eup %2066 }
 0x463   :  { %2072 = vrcp.f32 %v607_v32  ;;  %v2069_v43 = vpop.eup %2068  ;;  %v381_v28 = vmul.f32 %v2067_v13, %v2635_v15  ;;  %v396_v15 = vpack.c.bf16 %v129_v51, %v129_v51 }
 0x464   :  { %v398_v31 = vpack.c.bf16 %v383_v34, %v382_v2  ;;  %v2071_v39 = vpop.eup %2070  ;;  %2074 = vrcp.f32 %v603_v46  ;;  %v380_v59 = vmul.f32 %v2069_v43, %v2615_v17 }
 0x465   :  { %v650_v63 = vmul.f32 %v2071_v39, %v2631_v26  ;;  %v673_v26 = vrot.slane %v396_v15, 2 }
 0x466   :  { %411 = vmatpush.bf16.xpose.msrb.mxu2 %v398_v31  ;;  %680 = vmatpush.bf16.xpose.msra.mxu0 %v666_v44  ;;  %v397_v52 = vpack.c.bf16 %v381_v28, %v380_v59  ;;  %v2764_v44 = vpop.permute.xlu0 %755 }
 0x469   :  { %v2073_v49 = vpop.eup %2072 }
 0x46a   :  { %v601_v60 = vpop.xlane.xlu1 %600  ;;  %v651_v56 = vmul.f32 %v2073_v49, %v2703_v48  ;;  %v2075_v58 = vpop.eup %2074 }
 0x46b   :  { %2076 = vrcp.f32 %v601_v60  ;;  %v649_v50 = vmul.f32 %v2075_v58, %v2629_v45  ;;  %v779_v58 = vpop.permute.xlu2 %778 }
 0x46c   :  { %v665_v29 = vpack.c.bf16 %v651_v56, %v650_v63  ;;  %2078 = vrcp.f32 %v2235_v27  ;;  %v78_v27 = vld [vmem:[%s3301_s6] sm:$0xf] }
 0x46e   :  { %412 = vmatpush.bf16.xpose.msrb.mxu2 %v397_v52  ;;  %681 = vmatpush.bf16.xpose.msra.mxu0 %v665_v29  ;;  %v2767_v60 = vpop.permute.xlu0 %761  ;;  %v1931_v52 = vld [vmem:[%s3299_s5 + $0x18] sm:$0xff] }
 0x471   :  { %v2077_v38 = vpop.eup %2076 }
 0x472   :  { %v648_v24 = vmul.f32 %v2077_v38, %v2709_v7  ;;  %v62_v7 = vld [vmem:[%s3299_s5 + $0xc] sm:$0xf]  ;;  %v2079_v1 = vpop.eup %2078 }
 0x473   :  { %v725_v33 = vmul.f32 8.0, %v2079_v1  ;;  %vm729_vm4 = vweird.f32 %v2079_v1 }
 0x474   :  { %v664_v17 = vpack.c.bf16 %v649_v50, %v648_v24 }
 0x475   :  { %413 = vmatmul.bf16.vlgmr.msrb.gmra.mxu2 %v396_v15  ;;  %v726_v0 = vsub.f32 1.0, %v725_v33  ;;  %v774_v15 = vpop.permute.xlu2 %773 }
 0x476   :  { %682 = vmatpush.bf16.xpose.msra.mxu0 %v664_v17 }
 0x477   :  { %v727_v10 = vmul.f32 %v2079_v1, %v726_v0 }
 0x479   :  { %v728_v16 = vadd.f32 %v2079_v1, %v727_v10 }
 0x47b   :  { %v2760_v11 = vsel %vm729_vm4, %v2079_v1, %v728_v16  ;;  %vm1820_vm4 = vcmask 7168  }
 0x47d   :  { %683 = vmatmul.bf16.vlgmr.msra.gmra.mxu0 %v673_v26 }
 0x482   :  { %v696_v25 = vpop.permute.xlu1 %695 }
 0x48a   :  { %v784_v50 = vpop.permute.xlu1 %783 }
 0x492   :  { %v833_v1 = vpop.permute.xlu1 %832 }
 0x4f8   :  { %v414_v48 = vpop.f32.mrf.mxu2 }
 0x4fa   :  { %v684_v3 = vpop.f32.mrf.mxu0 }
 0x4fb   :  { %v689_v30 = vrot.slane %v684_v3, 4  ;;  %v769_v3 = vpop.permute.xlu0 %768 }
 0x4fd   :  { %v691_v47 = vsel %vm110_vm0, %v414_v48, %v689_v30 }
 0x4fe   :  { %v692_v22 = vpack.c.bf16 %v691_v47, %v691_v47 }
 0x500   :  { %v416_v55 = vpop.f32.mrf.mxu2  ;;  %v702_v54 = vsel %vm110_vm0, %v692_v22, 0 }
 0x501   :  { %711 = vmatpush.bf16.msra.mxu2 %v702_v54 }
 0x502   :  { %v686_v45 = vpop.f32.mrf.mxu0 }
 0x504   :  { %1849 = vmatmul.msk.bf16.vlgmr.msra.gmra.mxu2 %vm103_vm1, %v62_v7 }
 0x587   :  { %v713_v12 = vpop.f32.mrf.mxu2 }
 0x588   :  { %v714_v61 = vadd.f32 %v713_v12, %v696_v25 }
 0x58a   :  { %v717_v20 = vadd.f32 %v2216_v5, %v714_v61 }
 0x58c   :  { %v718_v4 = vrot.slane %v717_v20, 4 }
 0x58e   :  { %v719_v36 = vadd.f32 %v718_v4, %v717_v20 }
 0x58f   :  { %v715_v53 = vpop.f32.mrf.mxu2 }
 0x590   :  { %v720_v18 = vrot.slane %v719_v36, 2 }
 0x592   :  { %v721_v14 = vadd.f32 %v720_v18, %v719_v36 }
 0x594   :  { %v722_v21 = vrot.slane %v721_v14, 1 }
 0x596   :  { %v723_v8 = vadd.f32 %v722_v21, %v721_v14 }
 0x598   :  { %v731_v6 = vmul.f32 %v2760_v11, %v723_v8 }
 0x59a   :  { %v732_v40 = vsub.f32 %v717_v20, %v731_v6 }
 0x59c   :  { %v733_v35 = vmul.f32 %v732_v40, %v732_v40 }
 0x59e   :  { %v734_v57 = vrot.slane %v733_v35, 4 }
 0x5a0   :  { %v735_v9 = vadd.f32 %v734_v57, %v733_v35 }
 0x5a2   :  { %v736_v19 = vrot.slane %v735_v9, 2 }
 0x5a4   :  { %v737_v23 = vadd.f32 %v736_v19, %v735_v9 }
 0x5a6   :  { %v738_v41 = vrot.slane %v737_v23, 1 }
 0x5a8   :  { %v739_v62 = vadd.f32 %v738_v41, %v737_v23 }
 0x5aa   :  { %v740_v32 = vmul.f32 %v739_v62, %v2760_v11 }
 0x5ac   :  { %v741_v2 = vadd.f32 1e-05, %v740_v32 }
 0x5ae   :  { %2080 = vrsqrt.f32 %v741_v2  ;;  %vm748_vm6 = vweird.f32 %v741_v2 }
 0x5b4   :  { %v2081_v34 = vpop.eup %2080 }
 0x5b5   :  { %v743_v42 = vmul.f32 %v2081_v34, %v741_v2  ;;  %vm749_vm5 = vweird.f32 %v2081_v34 }
 0x5b6   :  { %vm750_vm7 = vmor %vm748_vm6, %vm749_vm5 }
 0x5b7   :  { %v744_v31 = vmul.f32 %v2081_v34, %v743_v42 }
 0x5b9   :  { %v745_v13 = vmul.f32 0.5, %v744_v31 }
 0x5bb   :  { %v746_v43 = vsub.f32 1.5, %v745_v13 }
 0x5bd   :  { %v747_v46 = vmul.f32 %v2081_v34, %v746_v43 }
 0x5bf   :  { %v751_v39 = vsel %vm750_vm7, %v2081_v34, %v747_v46 }
 0x5c0   :  { %v752_v28 = vmul.f32 %v751_v39, %v732_v40  ;;  %v1932_v39 = vld [vmem:[%s3299_s5 + $0x20] sm:$0xff] }
 0x5c2   :  { %v758_v49 = vmul.f32 %v2764_v44, %v752_v28  ;;  %v910_v28 = vpop.permute.xlu0 %909 }
 0x5c4   :  { %v764_v59 = vadd.f32 %v2767_v60, %v758_v49 }
 0x5c6   :  { %v765_v63 = vpack.c.bf16 %v764_v59, %v764_v59 }
 0x5c8   :  { %v803_v56 = vsel %vm110_vm0, %v765_v63, 0 }
 0x5c9   :  { %812 = vmatpush.bf16.msrb.mxu0 %v803_v56 }
 0x5cc   :  { %1858 = vmatmul.msk.bf16.vlgmr.msrb.gmra.mxu0 %vm103_vm1, %v1930_v37 }
 0x5dc   :  { %1859 = vmatmul.msk.bf16.gmra.mxu0 %vm103_vm1, %v1931_v52 }
 0x649   :  { %v814_v29 = vpop.f32.mrf.mxu0 }
 0x64a   :  { %v815_v30 = vadd.f32 %v814_v29, %v769_v3 }
 0x64c   :  { %v824_v7 = vmax.f32 %v815_v30, 0.0 }
 0x651   :  { %v816_v51 = vpop.f32.mrf.mxu0 }
 0x652   :  { %v817_v26 = vadd.f32 %v816_v51, %v774_v15 }
 0x654   :  { %v825_v55 = vmax.f32 %v817_v26, 0.0 }
 0x656   :  { %v828_v45 = vpack.c.bf16 %v825_v55, %v824_v7 }
 0x659   :  { %v819_v38 = vpop.f32.mrf.mxu0 }
 0x65a   :  { %v820_v24 = vadd.f32 %v819_v38, %v779_v58 }
 0x65c   :  { %v826_v47 = vmax.f32 %v820_v24, 0.0 }
 0x661   :  { %v821_v17 = vpop.f32.mrf.mxu0 }
 0x662   :  { %v822_v48 = vadd.f32 %v821_v17, %v784_v50 }
 0x664   :  { %v827_v22 = vmax.f32 %v822_v48, 0.0 }
 0x666   :  { %v829_v54 = vpack.c.bf16 %v827_v22, %v826_v47 }
 0x668   :  { %845 = vmatpush.bf16.msrb.mxu2 %v829_v54 }
 0x66c   :  { %846 = vmatpush.bf16.msrb.mxu2 %v828_v45 }
 0x66f   :  { %1860 = vmatmul.msk.bf16.vlgmr.msrb.gmra.mxu2 %vm835_vm8, %v78_v27 }
 0x6f2   :  { %v848_v33 = vpop.f32.mrf.mxu2 }
 0x6f3   :  { %v849_v25 = vadd.f32 %v848_v33, %v833_v1 }
 0x6f5   :  { %v852_v12 = vadd.f32 %v849_v25, %v764_v59 }
 0x6f7   :  { %v853_v61 = vrot.slane %v852_v12, 4 }
 0x6f9   :  { %v854_v0 = vadd.f32 %v853_v61, %v852_v12 }
 0x6fa   :  { %v850_v5 = vpop.f32.mrf.mxu2 }
 0x6fb   :  { %v855_v20 = vrot.slane %v854_v0, 2 }
 0x6fd   :  { %v856_v4 = vadd.f32 %v855_v20, %v854_v0 }
 0x6ff   :  { %v857_v10 = vrot.slane %v856_v4, 1 }
 0x701   :  { %v858_v36 = vadd.f32 %v857_v10, %v856_v4 }
 0x703   :  { %v859_v53 = vmul.f32 %v858_v36, %v2760_v11 }
 0x705   :  { %v860_v18 = vsub.f32 %v852_v12, %v859_v53 }
 0x707   :  { %v861_v16 = vmul.f32 %v860_v18, %v860_v18 }
 0x709   :  { %v862_v14 = vrot.slane %v861_v16, 4 }
 0x70b   :  { %v863_v21 = vadd.f32 %v862_v14, %v861_v16 }
 0x70d   :  { %v864_v8 = vrot.slane %v863_v21, 2 }
 0x70f   :  { %v865_v6 = vadd.f32 %v864_v8, %v863_v21 }
 0x711   :  { %v866_v40 = vrot.slane %v865_v6, 1 }
 0x713   :  { %v867_v35 = vadd.f32 %v866_v40, %v865_v6 }
 0x715   :  { %v868_v57 = vmul.f32 %v867_v35, %v2760_v11 }
 0x717   :  { %v869_v9 = vadd.f32 1e-05, %v868_v57  ;;  %v2832_v57 = vld [vmem:[%s3300_s2 + $0x48] sm:$0xff] }
 0x719   :  { %2082 = vrsqrt.f32 %v869_v9  ;;  %vm876_vm10 = vweird.f32 %v869_v9 }
 0x71f   :  { %v2083_v19 = vpop.eup %2082 }
 0x720   :  { %v871_v23 = vmul.f32 %v2083_v19, %v869_v9  ;;  %vm877_vm9 = vweird.f32 %v2083_v19 }
 0x721   :  { %vm878_vm11 = vmor %vm876_vm10, %vm877_vm9 }
 0x722   :  { %v872_v41 = vmul.f32 %v2083_v19, %v871_v23  ;;  %v2841_v23 = vld [vmem:[%s3300_s2 + $0x20] sm:$0xff] }
 0x724   :  { %v873_v62 = vmul.f32 0.5, %v872_v41 }
 0x726   :  { %v874_v32 = vsub.f32 1.5, %v873_v62  ;;  %v2847_v62 = vld [vmem:[%s3300_s2 + $0x50] sm:$0xff] }
 0x728   :  { %v875_v2 = vmul.f32 %v2083_v19, %v874_v32 }
 0x72a   :  { %v879_v34 = vsel %vm878_vm11, %v2083_v19, %v875_v2 }
 0x72b   :  { %v880_v42 = vmul.f32 %v879_v34, %v860_v18  ;;  %v2853_v34 = vld [vmem:[%s3300_s2 + $0x10] sm:$0xff] }
 0x72d   :  { %v881_v31 = vmul.f32 %v880_v42, %v2764_v44  ;;  %v915_v44 = vpop.permute.xlu2 %914 }
 0x72f   :  { %v2787_v13 = vadd.f32 %v881_v31, %v2767_v60  ;;  %v2859_v31 = vld [vmem:[%s3300_s2 + $0x58] sm:$0xff] }
 0x731   :  { %v906_v43 = vpack.c.bf16 %v2787_v13, %v2787_v13 }
 0x733   :  { %v937_v46 = vsel %vm110_vm0, %v906_v43, 0 }
 0x734   :  { %946 = vmatpush.bf16.msra.mxu2 %v937_v46 }
 0x737   :  { %1885 = vmatmul.msk.bf16.vlgmr.msra.gmra.mxu2 %vm103_vm1, %v1932_v39  ;;  %v2865_v39 = vld [vmem:[%s3300_s2 + $0x40] sm:$0xff] }
 0x7ba   :  { %v948_v49 = vpop.f32.mrf.mxu2 }
 0x7bb   :  { %v949_v59 = vadd.f32 %v948_v49, %v910_v28  ;;  %v2873_v49 = vld [vmem:[%s3300_s2 + $0x60] sm:$0xff] }
 0x7bd   :  { %v957_v63 = vmul.f32 0.5, %v949_v59 }
 0x7bf   :  { %958 = vxpose.xlu1.b32.start.end [1/1] (short) %v957_v63, 128  ;;  %v2879_v63 = vld [vmem:[%s3300_s2 + $0x18] sm:$0xff] }
 0x7c2   :  { %v950_v60 = vpop.f32.mrf.mxu2 }
 0x7c3   :  { %v951_v56 = vadd.f32 %v950_v60, %v915_v44  ;;  %v2889_v60 = vld [vmem:[%s3300_s2 + $0x30] sm:$0xff] }
 0x7c5   :  { %v998_v37 = vpack.c.bf16 %v951_v56, %v951_v56 }
 0x7c7   :  { %v1024_v52 = vsel %vm199_vm2, %v998_v37, 0  ;;  %v1266_v29 = vrot.slane %v998_v37, 2  ;;  %v2898_v37 = vld [vmem:[%s3300_s2 + $0x38] sm:$0xff] }
 0x7c8   :  { %1033 = vmatpush.bf16.msra.mxu0 %v1024_v52 }
 0x7c9   :  { %v2798_v51 = vsel %vm199_vm2, %v1266_v29, 0 }
 0x7ca   :  { %1938 = vmatpush.bf16.msrb.mxu3 %v2798_v51 }
 0x863   :  { %v974_v58 = vpop.trf.xlu1 }
 0x86b   :  { %v975_v38 = vpop.trf.xlu1 }
 0x86c   :  { %v2801_v15 = vpack.c.bf16 %v975_v38, %v974_v58  ;;  %v2910_v38 = vld [vmem:[%s3300_s2 + $0x70] sm:$0xff] }
 0x86e   :  { %1887 = vmatmul.msk.bf16.vlgmr.msra.gmra.mxu0 %vm174_vm3, %v2801_v15 }
 0x873   :  { %v976_v24 = vpop.trf.xlu1 }
 0x87b   :  { %v977_v50 = vpop.trf.xlu1 }
 0x87c   :  { %v991_v17 = vpack.c.bf16 %v977_v50, %v976_v24  ;;  %v2919_v50 = vld [vmem:[%s3300_s2 + $0x28] sm:$0xff] }
 0x87e   :  { %1251 = vrot.lane.b32.xlu0 %v991_v17, %s2234_s29  ;;  %1888 = vmatmul.msk.bf16.gmra.mxu0 %vm174_vm3, %v991_v17 }
 0x883   :  { %v978_v26 = vpop.trf.xlu1 }
 0x88b   :  { %v979_v48 = vpop.trf.xlu1 }
 0x88c   :  { %v992_v3 = vpack.c.bf16 %v979_v48, %v978_v26  ;;  %v2928_v26 = vld [vmem:[%s3300_s2] sm:$0xff] }
 0x88e   :  { %1253 = vrot.lane.b32.xlu2 %v992_v3, %s2234_s29  ;;  %1889 = vmatmul.msk.bf16.gmra.mxu0 %vm174_vm3, %v992_v3 }
 0x893   :  { %v980_v30 = vpop.trf.xlu1 }
 0x89b   :  { %v981_v47 = vpop.trf.xlu1 }
 0x89c   :  { %v993_v22 = vpack.c.bf16 %v981_v47, %v980_v30  ;;  %v2938_v30 = vld [vmem:[%s3300_s2 + $0x8] sm:$0xff] }
 0x89e   :  { %1255 = vrot.lane.b32.xlu2 %v993_v22, %s2234_s29  ;;  %1890 = vmatmul.msk.bf16.gmra.mxu0 %vm174_vm3, %v993_v22 }
 0x8a3   :  { %v982_v55 = vpop.trf.xlu1 }
 0x8ab   :  { %v983_v54 = vpop.trf.xlu1 }
 0x8ac   :  { %v2811_v7 = vpack.c.bf16 %v983_v54, %v982_v55  ;;  %v2947_v54 = vld [vmem:[%s3300_s2 + $0x68] sm:$0xff] }
 0x8ae   :  { %1891 = vmatmul.msk.bf16.gmra.mxu0 %vm174_vm3, %v2811_v7 }
 0x8b3   :  { %v984_v45 = vpop.trf.xlu1 }
 0x8bb   :  { %v985_v27 = vpop.trf.xlu1 }
 0x8bc   :  { %v995_v1 = vpack.c.bf16 %v985_v27, %v984_v45 }
 0x8be   :  { %1892 = vmatmul.msk.bf16.gmra.mxu0 %vm174_vm3, %v995_v1 }
 0x8c3   :  { %v986_v33 = vpop.trf.xlu1 }
 0x8cb   :  { %v987_v25 = vpop.trf.xlu1 }
 0x8cc   :  { %v2816_v12 = vpack.c.bf16 %v987_v25, %v986_v33 }
 0x8ce   :  { %1893 = vmatmul.msk.bf16.gmra.mxu0 %vm174_vm3, %v2816_v12 }
 0x8d3   :  { %v988_v61 = vpop.trf.xlu1 }
 0x8db   :  { %v989_v5 = vpop.trf.xlu1 }
 0x8dc   :  { %v2822_v20 = vpack.c.bf16 %v989_v5, %v988_v61  ;;  %v2953_v5 = vld [vmem:[%s3300_s2 + $0x78] sm:$0xff] }
 0x8de   :  { %1894 = vmatmul.msk.bf16.gmra.mxu0 %vm174_vm3, %v2822_v20 }
 0x8e8   :  { %v1254_v53 = vpop.permute.xlu2 %1253 }
 0x8eb   :  { %v2820_v0 = vpop.f32.mrf.mxu0 }
 0x8ec   :  { %v2932_v48 = vadd.f32 %v2928_v26, %v2820_v0 }
 0x8f0   :  { %v1252_v4 = vpop.permute.xlu0 %1251 }
 0x8f1   :  { %1896 = vmatmul.msk.bf16.vlgmr.msrb.gmra.mxu3 %vm174_vm3, %v1252_v4 }
 0x8f3   :  { %v1037_v10 = vpop.f32.mrf.mxu0 }
 0x8f4   :  { %v2941_v47 = vadd.f32 %v2938_v30, %v1037_v10 }
 0x8f8   :  { %v1256_v14 = vpop.permute.xlu2 %1255 }
 0x8fb   :  { %v1040_v36 = vpop.f32.mrf.mxu0 }
 0x8fc   :  { %v1041_v42 = vadd.f32 %v2853_v34, %v1040_v36 }
 0x901   :  { %1897 = vmatmul.msk.bf16.gmra.mxu3 %vm174_vm3, %v1254_v53 }
 0x903   :  { %v1042_v18 = vpop.f32.mrf.mxu0 }
 0x904   :  { %v2882_v44 = vadd.f32 %v2879_v63, %v1042_v18 }
 0x90b   :  { %v1045_v16 = vpop.f32.mrf.mxu0 }
 0x90c   :  { %v1046_v41 = vadd.f32 %v2841_v23, %v1045_v16 }
 0x911   :  { %1898 = vmatmul.msk.bf16.gmra.mxu3 %vm174_vm3, %v1256_v14 }
 0x913   :  { %v1047_v21 = vpop.f32.mrf.mxu0 }
 0x914   :  { %v2922_v17 = vadd.f32 %v2919_v50, %v1047_v21 }
 0x91b   :  { %v1050_v8 = vpop.f32.mrf.mxu0 }
 0x91c   :  { %v2892_v56 = vadd.f32 %v2889_v60, %v1050_v8 }
 0x923   :  { %v1052_v6 = vpop.f32.mrf.mxu0 }
 0x924   :  { %v2901_v52 = vadd.f32 %v2898_v37, %v1052_v6 }
 0x92b   :  { %v1055_v40 = vpop.f32.mrf.mxu0 }
 0x92c   :  { %v2868_v28 = vadd.f32 %v2865_v39, %v1055_v40 }
 0x933   :  { %v1057_v35 = vpop.f32.mrf.mxu0 }
 0x934   :  { %v2835_v9 = vadd.f32 %v2832_v57, %v1057_v35 }
 0x936   :  { %1093 = vmax.xlane.f32.xlu2 %v2835_v9 }
 0x93b   :  { %v1060_v19 = vpop.f32.mrf.mxu0 }
 0x93c   :  { %v1061_v32 = vadd.f32 %v2847_v62, %v1060_v19 }
 0x93e   :  { %1095 = vmax.xlane.f32.xlu0 %v1061_v32  ;;  %1083 = vmax.xlane.f32.xlu2 %v1046_v41 }
 0x943   :  { %v1062_v2 = vpop.f32.mrf.mxu0 }
 0x944   :  { %v1063_v43 = vadd.f32 %v2859_v31, %v1062_v2 }
 0x946   :  { %1097 = vmax.xlane.f32.xlu0 %v1063_v43  ;;  %1079 = vmax.xlane.f32.xlu2 %v1041_v42 }
 0x94b   :  { %v1065_v46 = vpop.f32.mrf.mxu0 }
 0x94c   :  { %v1066_v59 = vadd.f32 %v2873_v49, %v1065_v46 }
 0x94e   :  { %1099 = vmax.xlane.f32.xlu1 %v1066_v59  ;;  %1091 = vmax.xlane.f32.xlu0 %v2868_v28 }
 0x94f   :  { %1081 = vmax.xlane.f32.xlu2 %v2882_v44 }
 0x953   :  { %v1067_v29 = vpop.f32.mrf.mxu0 }
 0x956   :  { %1087 = vmax.xlane.f32.xlu0 %v2892_v56 }
 0x95b   :  { %v1070_v58 = vpop.f32.mrf.mxu0 }
 0x95c   :  { %v2913_v24 = vadd.f32 %v2910_v38, %v1070_v58  ;;  %v1863_v58 = vld [vmem:[%s3299_s5 + $0x28] sm:$0xf] }
 0x95e   :  { %1089 = vmax.xlane.f32.xlu0 %v2901_v52 }
 0x963   :  { %v1072_v25 = vpop.f32.mrf.mxu0 }
 0x964   :  { %v1073_v4 = vadd.f32 %v2953_v5, %v1072_v25 }
 0x967   :  { %1259 = vrot.lane.b32.xlu2 %v995_v1, %s2234_s29 }
 0x972   :  { %1257 = vrot.lane.b32.xlu0 %v2811_v7, %s2234_s29  ;;  %v1068_v7 = vadd.f32 %v2947_v54, %v1067_v29 }
 0x990   :  { %1103 = vmax.xlane.f32.xlu2 %v2913_v24 }
 0x99c   :  { %1085 = vmax.xlane.f32.xlu0 %v2922_v17 }
 0x9a4   :  { %1075 = vmax.xlane.f32.xlu0 %v2932_v48 }
 0x9a9   :  { %v1094_v3 = vpop.xlane.xlu2 %1093 }
 0x9aa   :  { %v1116_v21 = vsub.f32 %v2835_v9, %v1094_v3  ;;  %v927_v3 = vunpack.c.l.b16 %v1863_v58 }
 0x9ac   :  { %1077 = vmax.xlane.f32.xlu0 %v2941_v47  ;;  %v1141_v8 = vmul.f32 1.442695, %v1116_v21 }
 0x9b1   :  { %v1096_v22 = vpop.xlane.xlu0 %1095  ;;  %v1084_v55 = vpop.xlane.xlu2 %1083 }
 0x9b2   :  { %v1117_v45 = vsub.f32 %v1061_v32, %v1096_v22  ;;  %v1111_v27 = vsub.f32 %v1046_v41, %v1084_v55  ;;  %v929_v22 = vpack.c.b16 %v927_v3, %v927_v3 }
 0x9b4   :  { %v1143_v1 = vmul.f32 1.442695, %v1117_v45  ;;  %v1131_v33 = vmul.f32 1.442695, %v1111_v27  ;;  %1101 = vmax.xlane.f32.xlu0 %v1068_v7  ;;  %1886 = vmatmul.msk.bf16.gmra.mxu2 %vm103_vm1, %v929_v22 }
 0x9b6   :  { %2084 = vpow2.f32 %v1143_v1 }
 0x9b7   :  { %2086 = vpow2.f32 %v1131_v33 }
 0x9b9   :  { %v1098_v61 = vpop.xlane.xlu0 %1097  ;;  %v1080_v0 = vpop.xlane.xlu2 %1079 }
 0x9ba   :  { %v1118_v10 = vsub.f32 %v1063_v43, %v1098_v61  ;;  %v1109_v36 = vsub.f32 %v1041_v42, %v1080_v0 }
 0x9bc   :  { %v2956_v53 = vpop.eup %2084  ;;  %v1145_v18 = vmul.f32 1.442695, %v1118_v10  ;;  %v1127_v16 = vmul.f32 1.442695, %v1109_v36  ;;  %1105 = vmax.xlane.f32.xlu0 %v1073_v4 }
 0x9bd   :  { %v2958_v14 = vpop.eup %2086  ;;  %1175 = vadd.xlane.f32.xlu2 %v2956_v53 }
 0x9be   :  { %2088 = vpow2.f32 %v1145_v18  ;;  %1163 = vadd.xlane.f32.xlu1 %v2958_v14 }
 0x9bf   :  { %2090 = vpow2.f32 %v1127_v16  ;;  %v2988_v16 = vpop.f32.mrf.mxu3 }
 0x9c0   :  { %2092 = vpow2.f32 %v1141_v8 }
 0x9c1   :  { %v1100_v6 = vpop.xlane.xlu1 %1099  ;;  %v1092_v9 = vpop.xlane.xlu0 %1091 }
 0x9c2   :  { %v1119_v40 = vsub.f32 %v1066_v59, %v1100_v6  ;;  %v2976_v59 = vpop.xlane.xlu2 %1081 }
 0x9c4   :  { %v2963_v35 = vpop.eup %2088  ;;  %v1147_v19 = vmul.f32 1.442695, %v1119_v40 }
 0x9c5   :  { %v2965_v41 = vpop.eup %2090  ;;  %1177 = vadd.xlane.f32.xlu2 %v2963_v35 }
 0x9c6   :  { %2094 = vpow2.f32 %v1147_v19  ;;  %1159 = vadd.xlane.f32.xlu1 %v2965_v41  ;;  %v2969_v32 = vpop.eup %2092 }
 0x9c7   :  { %v2993_v19 = vpop.f32.mrf.mxu3 }
 0x9c9   :  { %v1088_v42 = vpop.xlane.xlu0 %1087 }
 0x9ca   :  { %v1260_v29 = vpop.permute.xlu2 %1259 }
 0x9cc   :  { %v2971_v2 = vpop.eup %2094 }
 0x9cd   :  { %1179 = vadd.xlane.f32.xlu0 %v2971_v2  ;;  %1173 = vadd.xlane.f32.xlu2 %v2969_v32 }
 0x9d1   :  { %v1090_v43 = vpop.xlane.xlu0 %1089 }
 0x9e4   :  { %v1258_v46 = vpop.permute.xlu0 %1257 }
 0x9e5   :  { %1899 = vmatmul.msk.bf16.gmra.mxu3 %vm174_vm3, %v1258_v46 }
 0x9f5   :  { %1900 = vmatmul.msk.bf16.gmra.mxu3 %vm174_vm3, %v1260_v29 }
 0xa03   :  { %v1104_v0 = vpop.xlane.xlu2 %1103 }
 0xa04   :  { %v1121_v18 = vsub.f32 %v2913_v24, %v1104_v0  ;;  %v1871_v24 = vld [vmem:[%s3298_s7 + $0x68] sm:$0xff] }
 0xa06   :  { %v1151_v21 = vmul.f32 1.442695, %v1121_v18 }
 0xa0f   :  { %v1086_v55 = vpop.xlane.xlu0 %1085 }
 0xa17   :  { %v1076_v45 = vpop.xlane.xlu0 %1075 }
 0xa18   :  { %v1107_v27 = vsub.f32 %v2932_v48, %v1076_v45  ;;  %v1115_v45 = vsub.f32 %v2868_v28, %v1092_v9  ;;  %v1112_v28 = vsub.f32 %v2922_v17, %v1086_v55 }
 0xa1a   :  { %v1123_v1 = vmul.f32 1.442695, %v1107_v27  ;;  %v1113_v27 = vsub.f32 %v2892_v56, %v1088_v42 }
 0xa1c   :  { %2096 = vpow2.f32 %v1123_v1  ;;  %v1139_v1 = vmul.f32 1.442695, %v1115_v45  ;;  %v1135_v0 = vmul.f32 1.442695, %v1113_v27 }
 0xa1f   :  { %v1078_v33 = vpop.xlane.xlu0 %1077 }
 0xa20   :  { %v1108_v55 = vsub.f32 %v2941_v47, %v1078_v33 }
 0xa22   :  { %v2984_v25 = vpop.eup %2096 }
 0xa23   :  { %1155 = vadd.xlane.f32.xlu1 %v2984_v25 }
 0xa27   :  { %v1102_v61 = vpop.xlane.xlu0 %1101 }
 0xa28   :  { %v1120_v10 = vsub.f32 %v1068_v7, %v1102_v61 }
 0xa2a   :  { %v1149_v36 = vmul.f32 1.442695, %v1120_v10 }
 0xa2c   :  { %2098 = vpow2.f32 %v1149_v36 }
 0xa2d   :  { %2100 = vpow2.f32 %v1151_v21  ;;  %v1125_v21 = vmul.f32 1.442695, %v1108_v55 }
 0xa2f   :  { %v1106_v8 = vpop.xlane.xlu0 %1105 }
 0xa30   :  { %v1122_v6 = vsub.f32 %v1073_v4, %v1106_v8  ;;  %v3004_v4 = vpop.f32.mrf.mxu3 }
 0xa32   :  { %v2990_v48 = vpop.eup %2098  ;;  %v1153_v40 = vmul.f32 1.442695, %v1122_v6 }
 0xa33   :  { %1181 = vadd.xlane.f32.xlu0 %v2990_v48  ;;  %v2995_v46 = vpop.eup %2100 }
 0xa34   :  { %2102 = vpow2.f32 %v1153_v40 }
 0xa35   :  { %2104 = vpow2.f32 %v1139_v1 }
 0xa36   :  { %2106 = vpow2.f32 %v1135_v0 }
 0xa38   :  { %v1315_v29 = vpop.f32.mrf.mxu3 }
 0xa39   :  { %v3035_v42 = vadd.f32 %v2919_v50, %v1315_v29  ;;  %v3047_v50 = vpop.f32.mrf.mxu2 }
 0xa3a   :  { %v3000_v7 = vpop.eup %2102 }
 0xa3b   :  { %1185 = vadd.xlane.f32.xlu2 %v3000_v7  ;;  %1183 = vadd.xlane.f32.xlu0 %v2995_v46 }
 0xa3c   :  { %919 = vperm.xlu1 %1946, %v1871_v24  }
 0xa40   :  { %v3010_v58 = vpop.f32.mrf.mxu3  ;;  %v1180_v24 = vpop.xlane.xlu0 %1179 }
 0xa41   :  { %v955_v6 = vpop.f32.mrf.mxu2 }
 0xa48   :  { %v3012_v3 = vpop.f32.mrf.mxu3 }
 0xa4f   :  { %1261 = vrot.lane.b32.xlu0 %v2816_v12, %s2234_s29  ;;  %v1114_v12 = vsub.f32 %v2901_v52, %v1090_v43  ;;  %v1133_v52 = vmul.f32 1.442695, %v1112_v28 }
 0xa51   :  { %v1137_v10 = vmul.f32 1.442695, %v1114_v12 }
 0xa53   :  { %1263 = vrot.lane.b32.xlu2 %v2822_v20, %s2234_s29  ;;  %v3021_v20 = vpop.eup %2104  ;;  %2108 = vpow2.f32 %v1137_v10 }
 0xa54   :  { %v3028_v56 = vpop.eup %2106  ;;  %2110 = vpow2.f32 %v1133_v52 }
 0xa59   :  { %v3032_v9 = vpop.eup %2108 }
 0xa5a   :  { %v3041_v43 = vpop.eup %2110 }
 0xa68   :  { %v3014_v22 = vpop.f32.mrf.mxu3 }
 0xa70   :  { %v3018_v61 = vpop.f32.mrf.mxu3 }
 0xa78   :  { %v1328_v36 = vpop.f32.mrf.mxu3 }
 0xa79   :  { %v3024_v18 = vadd.f32 %v2847_v62, %v1328_v36  ;;  %1171 = vadd.xlane.f32.xlu0 %v3021_v20  ;;  %v1110_v62 = vsub.f32 %v2882_v44, %v2976_v59  ;;  %v1176_v44 = vpop.xlane.xlu2 %1175 }
 0xa7b   :  { %1363 = vmax.xlane.f32.xlu1 %v3024_v18  ;;  %v1129_v17 = vmul.f32 1.442695, %v1110_v62 }
 0xa7c   :  { %1167 = vadd.xlane.f32.xlu2 %v3028_v56 }
 0xa7d   :  { %2112 = vpow2.f32 %v1129_v17 }
 0xa7e   :  { %2114 = vpow2.f32 %v1125_v21 }
 0xa81   :  { %1169 = vadd.xlane.f32.xlu0 %v3032_v9  ;;  %v1178_v40 = vpop.xlane.xlu2 %1177 }
 0xa83   :  { %1353 = vmax.xlane.f32.xlu1 %v3035_v42  ;;  %v3045_v8 = vpop.eup %2112 }
 0xa84   :  { %v3050_v59 = vpop.eup %2114 }
 0xa89   :  { %1165 = vadd.xlane.f32.xlu0 %v3041_v43  ;;  %v1174_v45 = vpop.xlane.xlu2 %1173 }
 0xa91   :  { %1161 = vadd.xlane.f32.xlu0 %v3045_v8 }
 0xa99   :  { %1157 = vadd.xlane.f32.xlu0 %v3050_v59 }
 0xaa6   :  { %v1182_v29 = vpop.xlane.xlu0 %1181 }
 0xaad   :  { %1249 = vrot.lane.b32.xlu0 %v2801_v15, %s2234_s29 }
 0xaae   :  { %v1184_v47 = vpop.xlane.xlu0 %1183  ;;  %v1186_v33 = vpop.xlane.xlu2 %1185 }
 0xaaf   :  { %2116 = vrcp.f32 %v1184_v47 }
 0xab0   :  { %2118 = vrcp.f32 %v1186_v33 }
 0xab1   :  { %2120 = vrcp.f32 %v1182_v29 }
 0xab2   :  { %2122 = vrcp.f32 %v1180_v24 }
 0xab3   :  { %2124 = vrcp.f32 %v1178_v40 }
 0xab4   :  { %2126 = vrcp.f32 %v1176_v44 }
 0xab5   :  { %v2117_v27 = vpop.eup %2116  ;;  %2128 = vrcp.f32 %v1174_v45 }
 0xab6   :  { %v2119_v1 = vpop.eup %2118  ;;  %v1217_v0 = vmul.f32 %v2117_v27, %v2995_v46  ;;  %v1264_v24 = vpop.permute.xlu2 %1263 }
 0xab7   :  { %v1218_v12 = vmul.f32 %v2119_v1, %v3000_v7  ;;  %v2121_v36 = vpop.eup %2120 }
 0xab8   :  { %v2123_v28 = vpop.eup %2122  ;;  %v1216_v52 = vmul.f32 %v2121_v36, %v2990_v48 }
 0xab9   :  { %v1227_v10 = vpack.c.bf16 %v1218_v12, %v1217_v0  ;;  %v1215_v15 = vmul.f32 %v2123_v28, %v2971_v2  ;;  %v2125_v55 = vpop.eup %2124 }
 0xaba   :  { %v2127_v21 = vpop.eup %2126  ;;  %v1214_v46 = vmul.f32 %v2125_v55, %v2963_v35  ;;  %v1164_v35 = vpop.xlane.xlu1 %1163 }
 0xabb   :  { %1228 = vmatpush.bf16.xpose.msrb.mxu1 %v1227_v10  ;;  %v1226_v17 = vpack.c.bf16 %v1216_v52, %v1215_v15  ;;  %v1213_v7 = vmul.f32 %v2127_v21, %v2956_v53  ;;  %v2129_v44 = vpop.eup %2128 }
 0xabc   :  { %v1212_v33 = vmul.f32 %v2129_v44, %v2969_v32 }
 0xabd   :  { %v1225_v6 = vpack.c.bf16 %v1214_v46, %v1213_v7 }
 0xac1   :  { %v1262_v62 = vpop.permute.xlu0 %1261 }
 0xac2   :  { %1901 = vmatmul.msk.bf16.gmra.mxu3 %vm174_vm3, %v1262_v62  ;;  %v1160_v36 = vpop.xlane.xlu1 %1159 }
 0xac3   :  { %1229 = vmatpush.bf16.xpose.msrb.mxu1 %v1226_v17 }
 0xaca   :  { %v1156_v17 = vpop.xlane.xlu1 %1155 }
 0xacb   :  { %1230 = vmatpush.bf16.xpose.msrb.mxu1 %v1225_v6 }
 0xad2   :  { %1902 = vmatmul.msk.bf16.gmra.mxu3 %vm174_vm3, %v1264_v24 }
 0xaec   :  { %v1172_v48 = vpop.xlane.xlu0 %1171 }
 0xaed   :  { %2130 = vrcp.f32 %v1172_v48  ;;  %v920_v48 = vpop.permute.xlu1 %919 }
 0xaee   :  { %v954_v44 = vadd.f32 %v3047_v50, %v920_v48 }
 0xaef   :  { %v1168_v2 = vpop.xlane.xlu2 %1167 }
 0xaf0   :  { %2132 = vrcp.f32 %v1168_v2 }
 0xaf3   :  { %v2131_v40 = vpop.eup %2130 }
 0xaf4   :  { %v1170_v29 = vpop.xlane.xlu0 %1169  ;;  %v1211_v47 = vmul.f32 %v2131_v40, %v3021_v20  ;;  %v3075_v40 = vpack.c.bf16 %v954_v44, %v954_v44 }
 0xaf5   :  { %2134 = vrcp.f32 %v1170_v29 }
 0xaf6   :  { %v1224_v53 = vpack.c.bf16 %v1212_v33, %v1211_v47  ;;  %v2133_v27 = vpop.eup %2132  ;;  %2136 = vrcp.f32 %v1164_v35  ;;  %v3082_v33 = vadd.f32 %v2841_v23, %v3004_v4  ;;  %v3088_v35 = vadd.f32 %v2879_v63, %v2993_v19 }
 0xaf7   :  { %v1209_v45 = vmul.f32 %v2133_v27, %v3028_v56  ;;  %v1326_v4 = vadd.f32 %v2832_v57, %v3018_v61  ;;  %v3100_v63 = vadd.f32 %v2889_v60, %v3010_v58 }
 0xaf8   :  { %1231 = vmatpush.bf16.xpose.msrb.mxu1 %v1224_v53 }
 0xafb   :  { %v2135_v1 = vpop.eup %2134 }
 0xafc   :  { %v1166_v0 = vpop.xlane.xlu0 %1165  ;;  %v1210_v12 = vmul.f32 %v2135_v1, %v3032_v9  ;;  %v2137_v28 = vpop.eup %2136 }
 0xafd   :  { %2138 = vrcp.f32 %v1166_v0  ;;  %v1207_v52 = vmul.f32 %v2137_v28, %v2958_v14  ;;  %v1364_v1 = vpop.xlane.xlu1 %1363 }
 0xafe   :  { %v1223_v10 = vpack.c.bf16 %v1210_v12, %v1209_v45  ;;  %2140 = vrcp.f32 %v1160_v36  ;;  %v1385_v45 = vsub.f32 %v3024_v18, %v1364_v1 }
 0xb00   :  { %1232 = vmatpush.bf16.xpose.msrb.mxu1 %v1223_v10  ;;  %v1411_v28 = vmul.f32 1.442695, %v1385_v45  ;;  %v1879_v45 = vld [vmem:[%s3298_s7 + $0xa8] sm:$0xff] }
 0xb03   :  { %v2139_v20 = vpop.eup %2138 }
 0xb04   :  { %v1162_v32 = vpop.xlane.xlu0 %1161  ;;  %v1208_v15 = vmul.f32 %v2139_v20, %v3041_v43  ;;  %v2141_v55 = vpop.eup %2140 }
 0xb05   :  { %2142 = vrcp.f32 %v1162_v32  ;;  %v1205_v21 = vmul.f32 %v2141_v55, %v2965_v41  ;;  %v1354_v48 = vpop.xlane.xlu1 %1353 }
 0xb06   :  { %v1222_v62 = vpack.c.bf16 %v1208_v15, %v1207_v52  ;;  %2144 = vrcp.f32 %v1156_v17 }
 0xb08   :  { %1233 = vmatpush.bf16.xpose.msrb.mxu1 %v1222_v62 }
 0xb0b   :  { %v2143_v56 = vpop.eup %2142 }
 0xb0c   :  { %v1158_v9 = vpop.xlane.xlu0 %1157  ;;  %v1206_v46 = vmul.f32 %v2143_v56, %v3045_v8  ;;  %v2145_v6 = vpop.eup %2144 }
 0xb0d   :  { %2146 = vrcp.f32 %v1158_v9  ;;  %v1203_v14 = vmul.f32 %v2145_v6, %v2984_v25  ;;  %v1330_v8 = vpop.f32.mrf.mxu3 }
 0xb0e   :  { %v1221_v7 = vpack.c.bf16 %v1206_v46, %v1205_v21  ;;  %v1331_v23 = vadd.f32 %v2859_v31, %v1330_v8  ;;  %v3110_v31 = vadd.f32 %v2853_v34, %v2988_v16 }
 0xb10   :  { %1234 = vmatpush.bf16.xpose.msrb.mxu1 %v1221_v7 }
 0xb13   :  { %v2147_v24 = vpop.eup %2146 }
 0xb14   :  { %v1204_v43 = vmul.f32 %v2147_v24, %v3050_v59 }
 0xb16   :  { %v1220_v2 = vpack.c.bf16 %v1204_v43, %v1203_v14 }
 0xb18   :  { %1235 = vmatpush.bf16.xpose.msrb.mxu1 %v1220_v2 }
 0xb1f   :  { %1236 = vmatmul.bf16.vlgmr.msrb.gmra.mxu1 %v3075_v40  ;;  %v1250_v41 = vpop.permute.xlu0 %1249 }
 0xb20   :  { %1301 = vmatpush.bf16.msra.mxu1 %v2798_v51 }
 0xb2f   :  { %1895 = vmatmul.msk.bf16.vlgmr.msra.gmra.mxu1 %vm174_vm3, %v1250_v41 }
 0xb45   :  { %v1333_v29 = vpop.f32.mrf.mxu3 }
 0xb4d   :  { %v1335_v47 = vpop.f32.mrf.mxu3 }
 0xb4e   :  { %v1336_v25 = vadd.f32 %v2947_v54, %v1335_v47  ;;  %v1334_v54 = vadd.f32 %v2873_v49, %v1333_v29  ;;  %v3105_v49 = vadd.f32 %v2898_v37, %v3012_v3  ;;  %v1380_v47 = vsub.f32 %v3035_v42, %v1354_v48 }
 0xb50   :  { %1369 = vmax.xlane.f32.xlu0 %v1336_v25 }
 0xb55   :  { %v1338_v59 = vpop.f32.mrf.mxu3 }
 0xb56   :  { %v1339_v51 = vadd.f32 %v2910_v38, %v1338_v59  ;;  %v1324_v38 = vadd.f32 %v2865_v39, %v3014_v22 }
 0xb58   :  { %1351 = vmax.xlane.f32.xlu0 %v3082_v33  ;;  %1371 = vmax.xlane.f32.xlu2 %v1339_v51 }
 0xb5d   :  { %v1340_v50 = vpop.f32.mrf.mxu3 }
 0xb5e   :  { %v1341_v53 = vadd.f32 %v2953_v5, %v1340_v50 }
 0xb60   :  { %1349 = vmax.xlane.f32.xlu0 %v3088_v35  ;;  %1373 = vmax.xlane.f32.xlu2 %v1341_v53 }
 0xb68   :  { %1367 = vmax.xlane.f32.xlu2 %v1334_v54 }
 0xb70   :  { %1365 = vmax.xlane.f32.xlu2 %v1331_v23 }
 0xb78   :  { %1359 = vmax.xlane.f32.xlu2 %v1324_v38 }
 0xb80   :  { %1361 = vmax.xlane.f32.xlu2 %v1326_v4 }
 0xb88   :  { %1355 = vmax.xlane.f32.xlu2 %v3100_v63 }
 0xb90   :  { %1357 = vmax.xlane.f32.xlu2 %v3105_v49 }
 0xb98   :  { %1347 = vmax.xlane.f32.xlu2 %v3110_v31 }
 0xb9c   :  { %v3113_v57 = vpop.f32.mrf.mxu1 }
 0xba4   :  { %v1239_v39 = vpop.f32.mrf.mxu1 }
 0xbac   :  { %v1303_v5 = vpop.f32.mrf.mxu1 }
 0xbad   :  { %v3116_v60 = vadd.f32 %v2928_v26, %v1303_v5 }
 0xbaf   :  { %1343 = vmax.xlane.f32.xlu0 %v3116_v60 }
 0xbb4   :  { %v1305_v12 = vpop.f32.mrf.mxu1 }
 0xbb5   :  { %v3127_v20 = vadd.f32 %v2938_v30, %v1305_v12 }
 0xbc3   :  { %v1370_v19 = vpop.xlane.xlu0 %1369 }
 0xbc4   :  { %v1388_v37 = vsub.f32 %v1336_v25, %v1370_v19 }
 0xbc6   :  { %v1417_v58 = vmul.f32 1.442695, %v1388_v37 }
 0xbc8   :  { %2148 = vpow2.f32 %v1417_v58  ;;  %v1872_v58 = vld [vmem:[%s3298_s7 + $0x70] sm:$0xff] }
 0xbcb   :  { %v1372_v3 = vpop.xlane.xlu2 %1371  ;;  %v1352_v46 = vpop.xlane.xlu0 %1351 }
 0xbcc   :  { %v1389_v22 = vsub.f32 %v1339_v51, %v1372_v3  ;;  %v1379_v43 = vsub.f32 %v3082_v33, %v1352_v46  ;;  %v1401_v33 = vmul.f32 1.442695, %v1380_v47 }
 0xbce   :  { %v3119_v61 = vpop.eup %2148  ;;  %v1419_v34 = vmul.f32 1.442695, %v1389_v22  ;;  %v1399_v2 = vmul.f32 1.442695, %v1379_v43  ;;  %v1877_v22 = vld [vmem:[%s3298_s7 + $0x98] sm:$0xff] }
 0xbcf   :  { %1449 = vadd.xlane.f32.xlu0 %v3119_v61 }
 0xbd0   :  { %2150 = vpow2.f32 %v1419_v34  ;;  %v1873_v34 = vld [vmem:[%s3298_s7 + $0x78] sm:$0xff] }
 0xbd3   :  { %v1374_v16 = vpop.xlane.xlu2 %1373  ;;  %v1350_v41 = vpop.xlane.xlu0 %1349 }
 0xbd4   :  { %v1390_v27 = vsub.f32 %v1341_v53, %v1374_v16  ;;  %v1378_v59 = vsub.f32 %v3088_v35, %v1350_v41 }
 0xbd6   :  { %v1421_v0 = vmul.f32 1.442695, %v1390_v27  ;;  %v3122_v26 = vpop.eup %2150  ;;  %v1397_v51 = vmul.f32 1.442695, %v1378_v59  ;;  %v1878_v27 = vld [vmem:[%s3298_s7 + $0xa0] sm:$0xff] }
 0xbd7   :  { %1451 = vadd.xlane.f32.xlu1 %v3122_v26 }
 0xbd8   :  { %2152 = vpow2.f32 %v1421_v0 }
 0xbdb   :  { %v1368_v10 = vpop.xlane.xlu2 %1367 }
 0xbdc   :  { %v1387_v36 = vsub.f32 %v1334_v54, %v1368_v10 }
 0xbde   :  { %v1415_v32 = vmul.f32 1.442695, %v1387_v36  ;;  %v3129_v52 = vpop.eup %2152 }
 0xbdf   :  { %1345 = vmax.xlane.f32.xlu1 %v3127_v20  ;;  %1453 = vadd.xlane.f32.xlu2 %v3129_v52 }
 0xbe0   :  { %2154 = vpow2.f32 %v1415_v32 }
 0xbe1   :  { %2156 = vpow2.f32 %v1411_v28 }
 0xbe3   :  { %v1366_v15 = vpop.xlane.xlu2 %1365 }
 0xbe4   :  { %v1386_v62 = vsub.f32 %v1331_v23, %v1366_v15 }
 0xbe6   :  { %v3133_v18 = vpop.eup %2154  ;;  %v1413_v17 = vmul.f32 1.442695, %v1386_v62 }
 0xbe7   :  { %v3135_v55 = vpop.eup %2156  ;;  %1447 = vadd.xlane.f32.xlu2 %v3133_v18 }
 0xbe8   :  { %2158 = vpow2.f32 %v1413_v17  ;;  %1443 = vadd.xlane.f32.xlu1 %v3135_v55 }
 0xbeb   :  { %v1360_v30 = vpop.xlane.xlu2 %1359 }
 0xbec   :  { %v1383_v56 = vsub.f32 %v1324_v38, %v1360_v30 }
 0xbee   :  { %v3139_v9 = vpop.eup %2158  ;;  %v1407_v21 = vmul.f32 1.442695, %v1383_v56 }
 0xbef   :  { %1445 = vadd.xlane.f32.xlu2 %v3139_v9 }
 0xbf0   :  { %2160 = vpow2.f32 %v1407_v21 }
 0xbf3   :  { %v1362_v7 = vpop.xlane.xlu2 %1361 }
 0xbf4   :  { %v1384_v6 = vsub.f32 %v1326_v4, %v1362_v7 }
 0xbf6   :  { %v3142_v24 = vpop.eup %2160  ;;  %v1409_v14 = vmul.f32 1.442695, %v1384_v6 }
 0xbf7   :  { %1439 = vadd.xlane.f32.xlu0 %v3142_v24 }
 0xbf8   :  { %2162 = vpow2.f32 %v1409_v14 }
 0xbf9   :  { %2164 = vpow2.f32 %v1399_v2 }
 0xbfb   :  { %v1356_v44 = vpop.xlane.xlu2 %1355 }
 0xbfc   :  { %v1381_v8 = vsub.f32 %v3100_v63, %v1356_v44 }
 0xbfe   :  { %v3147_v29 = vpop.eup %2162  ;;  %v1403_v25 = vmul.f32 1.442695, %v1381_v8  ;;  %v1874_v8 = vld [vmem:[%s3298_s7 + $0x80] sm:$0xff] }
 0xbff   :  { %1441 = vadd.xlane.f32.xlu1 %v3147_v29  ;;  %v3153_v54 = vpop.eup %2164 }
 0xc00   :  { %2166 = vpow2.f32 %v1403_v25 }
 0xc01   :  { %2168 = vpow2.f32 %v1401_v33 }
 0xc02   :  { %2170 = vpow2.f32 %v1397_v51 }
 0xc03   :  { %v1358_v50 = vpop.xlane.xlu2 %1357 }
 0xc04   :  { %v1382_v53 = vsub.f32 %v3105_v49, %v1358_v50 }
 0xc06   :  { %v3155_v23 = vpop.eup %2166  ;;  %v1405_v38 = vmul.f32 1.442695, %v1382_v53 }
 0xc07   :  { %1431 = vadd.xlane.f32.xlu1 %v3153_v54  ;;  %1435 = vadd.xlane.f32.xlu2 %v3155_v23  ;;  %v3159_v35 = vpop.eup %2168 }
 0xc08   :  { %2172 = vpow2.f32 %v1405_v38  ;;  %v3162_v63 = vpop.eup %2170 }
 0xc0b   :  { %v1348_v42 = vpop.xlane.xlu2 %1347 }
 0xc0c   :  { %v1377_v4 = vsub.f32 %v3110_v31, %v1348_v42 }
 0xc0e   :  { %v3164_v49 = vpop.eup %2172  ;;  %v1395_v39 = vmul.f32 1.442695, %v1377_v4 }
 0xc0f   :  { %1429 = vadd.xlane.f32.xlu1 %v3162_v63  ;;  %1433 = vadd.xlane.f32.xlu2 %v3159_v35 }
 0xc10   :  { %2174 = vpow2.f32 %v1395_v39  ;;  %1437 = vadd.xlane.f32.xlu0 %v3164_v49 }
 0xc16   :  { %v3169_v5 = vpop.eup %2174 }
 0xc18   :  { %1427 = vadd.xlane.f32.xlu0 %v3169_v5 }
 0xc22   :  { %v1344_v19 = vpop.xlane.xlu0 %1343 }
 0xc23   :  { %v1375_v37 = vsub.f32 %v3116_v60, %v1344_v19  ;;  %v1876_v60 = vld [vmem:[%s3298_s7 + $0x90] sm:$0xff] }
 0xc25   :  { %v1391_v31 = vmul.f32 1.442695, %v1375_v37 }
 0xc27   :  { %2176 = vpow2.f32 %v1391_v31 }
 0xc28   :  { %1518 = vperm.xlu1 %1946, %v1872_v58  }
 0xc2d   :  { %v3176_v3 = vpop.eup %2176 }
 0xc2e   :  { %1423 = vadd.xlane.f32.xlu2 %v3176_v3 }
 0xc30   :  { %1594 = vperm.xlu1 %1946, %v1877_v22  }
 0xc38   :  { %1589 = vperm.xlu1 %1946, %v1876_v60  }
 0xc42   :  { %v1450_v28 = vpop.xlane.xlu0 %1449 }
 0xc46   :  { %1571 = vperm.xlu2 %1947, %v1873_v34  }
 0xc4a   :  { %v1452_v16 = vpop.xlane.xlu1 %1451 }
 0xc4b   :  { %2178 = vrcp.f32 %v1452_v16 }
 0xc4e   :  { %1599 = vperm.xlu2 %1947, %v1878_v27  }
 0xc51   :  { %v2179_v36 = vpop.eup %2178 }
 0xc52   :  { %v1346_v1 = vpop.xlane.xlu1 %1345  ;;  %v1454_v0 = vpop.xlane.xlu2 %1453  ;;  %v1485_v15 = vmul.f32 %v2179_v36, %v3122_v26  ;;  %v1496_v36 = vrot.slane %v3075_v40, 2 }
 0xc53   :  { %v1376_v12 = vsub.f32 %v3127_v20, %v1346_v1  ;;  %2180 = vrcp.f32 %v1454_v0 }
 0xc55   :  { %v1393_v10 = vmul.f32 1.442695, %v1376_v12 }
 0xc56   :  { %1648 = vperm.xlu2 %1947, %v1879_v45  }
 0xc57   :  { %2182 = vpow2.f32 %v1393_v10 }
 0xc58   :  { %2184 = vrcp.f32 %v1450_v28 }
 0xc59   :  { %v2181_v32 = vpop.eup %2180 }
 0xc5a   :  { %v1486_v62 = vmul.f32 %v2181_v32, %v3129_v52  ;;  %v1448_v17 = vpop.xlane.xlu2 %1447 }
 0xc5b   :  { %2186 = vrcp.f32 %v1448_v17  ;;  %v1444_v21 = vpop.xlane.xlu1 %1443 }
 0xc5c   :  { %v1494_v30 = vpack.c.bf16 %v1486_v62, %v1485_v15  ;;  %2188 = vrcp.f32 %v1444_v21 }
 0xc5d   :  { %v3197_v56 = vpop.eup %2182 }
 0xc5e   :  { %1425 = vadd.xlane.f32.xlu0 %v3197_v56  ;;  %1498 = vmatpush.bf16.xpose.msrb.mxu2 %v1494_v30  ;;  %v2185_v20 = vpop.eup %2184 }
 0xc5f   :  { %v1484_v26 = vmul.f32 %v2185_v20, %v3119_v61 }
 0xc61   :  { %v2187_v46 = vpop.eup %2186 }
 0xc62   :  { %v1446_v7 = vpop.xlane.xlu2 %1445  ;;  %v1483_v6 = vmul.f32 %v2187_v46, %v3133_v18  ;;  %v2189_v52 = vpop.eup %2188  ;;  %v1875_v18 = vld [vmem:[%s3298_s7 + $0x88] sm:$0xff] }
 0xc63   :  { %2190 = vrcp.f32 %v1446_v7  ;;  %v1481_v48 = vmul.f32 %v2189_v52, %v3135_v55 }
 0xc64   :  { %v1493_v14 = vpack.c.bf16 %v1484_v26, %v1483_v6 }
 0xc66   :  { %1499 = vmatpush.bf16.xpose.msrb.mxu2 %v1493_v14 }
 0xc69   :  { %v2191_v43 = vpop.eup %2190 }
 0xc6a   :  { %v1482_v2 = vmul.f32 %v2191_v43, %v3139_v9  ;;  %v1440_v41 = vpop.xlane.xlu0 %1439 }
 0xc6b   :  { %2192 = vrcp.f32 %v1440_v41 }
 0xc6c   :  { %v1492_v44 = vpack.c.bf16 %v1482_v2, %v1481_v48 }
 0xc6e   :  { %1500 = vmatpush.bf16.xpose.msrb.mxu2 %v1492_v44 }
 0xc71   :  { %v2193_v61 = vpop.eup %2192 }
 0xc72   :  { %v1442_v47 = vpop.xlane.xlu1 %1441  ;;  %1577 = vperm.xlu0 %1945, %v1874_v8   ;;  %v1479_v55 = vmul.f32 %v2193_v61, %v3142_v24 }
 0xc73   :  { %2194 = vrcp.f32 %v1442_v47 }
 0xc79   :  { %v2195_v25 = vpop.eup %2194 }
 0xc7a   :  { %v1480_v9 = vmul.f32 %v2195_v25, %v3147_v29  ;;  %1584 = vperm.xlu0 %1945, %v1875_v18   ;;  %v1436_v59 = vpop.xlane.xlu2 %1435  ;;  %v1432_v50 = vpop.xlane.xlu1 %1431 }
 0xc7b   :  { %2196 = vrcp.f32 %v1436_v59 }
 0xc7c   :  { %v1491_v33 = vpack.c.bf16 %v1480_v9, %v1479_v55 }
 0xc7e   :  { %1501 = vmatpush.bf16.xpose.msrb.mxu2 %v1491_v33  ;;  %v1703_v33 = vld [vmem:[%s3302_s8 + $0x8] sm:$0x1] }
 0xc81   :  { %v2197_v38 = vpop.eup %2196 }
 0xc82   :  { %v1434_v53 = vpop.xlane.xlu2 %1433  ;;  %v1477_v4 = vmul.f32 %v2197_v38, %v3155_v23  ;;  %v1430_v37 = vpop.xlane.xlu1 %1429 }
 0xc83   :  { %v1438_v51 = vpop.xlane.xlu0 %1437 }
 0xc84   :  { %2198 = vrcp.f32 %v1438_v51 }
 0xc85   :  { %2200 = vrcp.f32 %v1434_v53  ;;  %v1713_v53 = vunpack.c.l.b16 %v1703_v33 }
 0xc86   :  { %2202 = vrcp.f32 %v1432_v50 }
 0xc8a   :  { %v2199_v42 = vpop.eup %2198 }
 0xc8b   :  { %v1478_v39 = vmul.f32 %v2199_v42, %v3164_v49  ;;  %v1428_v24 = vpop.xlane.xlu0 %1427  ;;  %v2201_v29 = vpop.eup %2200 }
 0xc8c   :  { %v2203_v31 = vpop.eup %2202  ;;  %2204 = vrcp.f32 %v1428_v24  ;;  %v1476_v58 = vmul.f32 %v2201_v29, %v3159_v35  ;;  %v1715_v24 = vpack.c.b16 %v1713_v53, %v1713_v53 }
 0xc8d   :  { %v1490_v19 = vpack.c.bf16 %v1478_v39, %v1477_v4  ;;  %2206 = vrcp.f32 %v1430_v37  ;;  %v1475_v22 = vmul.f32 %v2203_v31, %v3153_v54 }
 0xc8e   :  { %v1723_v37 = vsel %vm1721_vm15, %v1715_v24, 0 }
 0xc8f   :  { %1502 = vmatpush.bf16.xpose.msrb.mxu2 %v1490_v19  ;;  %v1489_v60 = vpack.c.bf16 %v1476_v58, %v1475_v22  ;;  %v1933_v58 = vld [vmem:[%s3299_s5 + $0x30] sm:$0xff]  ;;  %v1935_v22 = vld [vmem:[%s3302_s8] sm:$0xff] }
 0xc92   :  { %v2205_v34 = vpop.eup %2204 }
 0xc93   :  { %v2207_v16 = vpop.eup %2206  ;;  %v1473_v23 = vmul.f32 %v2205_v34, %v3169_v5  ;;  %v1698_v34 = vld [vmem:[%s3303_s1] sm:$0xff] }
 0xc94   :  { %v1474_v49 = vmul.f32 %v2207_v16, %v3162_v63  ;;  %v1699_v16 = vld [vmem:[%s3303_s1 + $0x8] sm:$0xff] }
 0xc96   :  { %v1488_v27 = vpack.c.bf16 %v1474_v49, %v1473_v23  ;;  %v1704_v23 = vpack.c.bf16 %v1699_v16, %v1698_v34 }
 0xc97   :  { %1503 = vmatpush.bf16.xpose.msrb.mxu2 %v1489_v60  ;;  %v1934_v60 = vld [vmem:[%s3299_s5 + $0x38] sm:$0xff] }
 0xc9a   :  { %v1519_v17 = vpop.permute.xlu1 %1518 }
 0xc9f   :  { %1504 = vmatpush.bf16.xpose.msrb.mxu2 %v1488_v27  ;;  %v1948_v27 = vld [vmem:[%s3304_s10] ss:$0 sm:$0xff] }
 0xca1   :  { %v1424_v1 = vpop.xlane.xlu2 %1423 }
 0xca2   :  { %2208 = vrcp.f32 %v1424_v1 }
 0xca8   :  { %v2209_v45 = vpop.eup %2208 }
 0xca9   :  { %v1471_v35 = vmul.f32 %v2209_v45, %v3176_v3  ;;  %v1864_v3 = vld [vmem:[%s3299_s5 + $0x2c] sm:$0xf]  ;;  %v3234_v42 = vpop.permute.xlu2 %1571  ;;  %s2236_s5 = smov 96  }
 0xcaa   :  { %1758 = vrot.lane.b32.xlu0 %v1948_v27, %s2236_s5 }
 0xcd1   :  { %v1426_v0 = vpop.xlane.xlu0 %1425 }
 0xcd2   :  { %2210 = vrcp.f32 %v1426_v0  ;;  %v1595_v0 = vpop.permute.xlu1 %1594 }
 0xcd8   :  { %v2211_v12 = vpop.eup %2210 }
 0xcd9   :  { %v1472_v54 = vmul.f32 %v2211_v12, %v3197_v56 }
 0xcda   :  { %v1590_v12 = vpop.permute.xlu1 %1589 }
 0xcdb   :  { %v1487_v10 = vpack.c.bf16 %v1472_v54, %v1471_v35  ;;  %v1600_v54 = vpop.permute.xlu2 %1599 }
 0xcdd   :  { %1505 = vmatpush.bf16.xpose.msrb.mxu2 %v1487_v10 }
 0xce4   :  { %1506 = vmatmul.bf16.vlgmr.msrb.gmra.mxu2 %v1496_v36  ;;  %v3237_v39 = vpop.permute.xlu0 %1577 }
 0xd67   :  { %v1507_v5 = vpop.f32.mrf.mxu2 }
 0xd68   :  { %v1512_v28 = vrot.slane %v1507_v5, 4 }
 0xd6a   :  { %v1514_v63 = vsel %vm110_vm0, %v3113_v57, %v1512_v28  ;;  %v1585_v28 = vpop.permute.xlu0 %1584 }
 0xd6b   :  { %v1515_v32 = vpack.c.bf16 %v1514_v63, %v1514_v63 }
 0xd6d   :  { %v1525_v15 = vsel %vm110_vm0, %v1515_v32, 0 }
 0xd6e   :  { %1534 = vmatpush.bf16.msrb.mxu1 %v1525_v15 }
 0xd6f   :  { %v1509_v62 = vpop.f32.mrf.mxu2 }
 0xd71   :  { %1903 = vmatmul.msk.bf16.vlgmr.msrb.gmra.mxu1 %vm103_vm1, %v1864_v3 }
 0xdee   :  { %v1536_v30 = vpop.f32.mrf.mxu1 }
 0xdef   :  { %v1537_v40 = vadd.f32 %v1536_v30, %v1519_v17 }
 0xdf1   :  { %v1540_v56 = vadd.f32 %v1537_v40, %v2787_v13  ;;  %v1937_v40 = vld [vmem:[%s3305_s9 + $0x8] sm:$0xff] }
 0xdf3   :  { %v1541_v21 = vrot.slane %v1540_v56, 4 }
 0xdf5   :  { %v1542_v20 = vadd.f32 %v1541_v21, %v1540_v56  ;;  %v1880_v21 = vld [vmem:[%s3301_s6 + $0x4] sm:$0xf] }
 0xdf6   :  { %v1538_v46 = vpop.f32.mrf.mxu1 }
 0xdf7   :  { %v1543_v57 = vrot.slane %v1542_v20, 2 }
 0xdf9   :  { %v1544_v7 = vadd.f32 %v1543_v57, %v1542_v20  ;;  %v1936_v20 = vld [vmem:[%s3305_s9] sm:$0xff] }
 0xdfb   :  { %v1545_v6 = vrot.slane %v1544_v7, 1 }
 0xdfd   :  { %v1546_v26 = vadd.f32 %v1545_v6, %v1544_v7 }
 0xdff   :  { %v1547_v14 = vmul.f32 %v1546_v26, %v2760_v11 }
 0xe01   :  { %v1548_v52 = vsub.f32 %v1540_v56, %v1547_v14 }
 0xe03   :  { %v1549_v43 = vmul.f32 %v1548_v52, %v1548_v52 }
 0xe05   :  { %v1550_v48 = vrot.slane %v1549_v43, 4 }
 0xe07   :  { %v1551_v2 = vadd.f32 %v1550_v48, %v1549_v43 }
 0xe09   :  { %v1552_v44 = vrot.slane %v1551_v2, 2 }
 0xe0b   :  { %v1553_v41 = vadd.f32 %v1552_v44, %v1551_v2 }
 0xe0d   :  { %v1554_v8 = vrot.slane %v1553_v41, 1 }
 0xe0f   :  { %v1555_v47 = vadd.f32 %v1554_v8, %v1553_v41 }
 0xe11   :  { %v1556_v61 = vmul.f32 %v1555_v47, %v2760_v11 }
 0xe13   :  { %v1557_v13 = vadd.f32 1e-05, %v1556_v61 }
 0xe15   :  { %2212 = vrsqrt.f32 %v1557_v13  ;;  %vm1564_vm13 = vweird.f32 %v1557_v13 }
 0xe1b   :  { %v2213_v18 = vpop.eup %2212 }
 0xe1c   :  { %v1559_v25 = vmul.f32 %v2213_v18, %v1557_v13  ;;  %vm1565_vm12 = vweird.f32 %v2213_v18 }
 0xe1d   :  { %vm1566_vm14 = vmor %vm1564_vm13, %vm1565_vm12 }
 0xe1e   :  { %v1560_v55 = vmul.f32 %v2213_v18, %v1559_v25 }
 0xe20   :  { %v1561_v9 = vmul.f32 0.5, %v1560_v55 }
 0xe22   :  { %v1562_v59 = vsub.f32 1.5, %v1561_v9 }
 0xe24   :  { %v1563_v51 = vmul.f32 %v2213_v18, %v1562_v59 }
 0xe26   :  { %v1567_v50 = vsel %vm1566_vm14, %v2213_v18, %v1563_v51  ;;  %v1759_v51 = vpop.permute.xlu0 %1758 }
 0xe27   :  { %v1568_v38 = vmul.f32 %v1567_v50, %v1548_v52  ;;  %v1649_v52 = vpop.permute.xlu2 %1648 }
 0xe29   :  { %v1574_v4 = vmul.f32 %v3234_v42, %v1568_v38 }
 0xe2b   :  { %v1580_v19 = vadd.f32 %v3237_v39, %v1574_v4 }
 0xe2d   :  { %v1581_v29 = vpack.c.bf16 %v1580_v19, %v1580_v19 }
 0xe2f   :  { %v1619_v31 = vsel %vm110_vm0, %v1581_v29, 0  ;;  %vm1717_vm0 = vcmask 146432  }
 0xe30   :  { %1628 = vmatpush.bf16.msra.mxu1 %v1619_v31 }
 0xe33   :  { %1912 = vmatmul.msk.bf16.vlgmr.msra.gmra.mxu1 %vm103_vm1, %v1933_v58 }
 0xe34   :  { %1731 = vmatpush.bf16.msrb.mxu1 %v1723_v37  ;;  %v1949_v37 = vld [vmem:[%s3306_s11] ss:$0 sm:$0xff] }
 0xe38   :  { %1732 = vmatpush.bf16.msrb.mxu1 %v1935_v22 }
 0xe43   :  { %1913 = vmatmul.msk.bf16.gmra.mxu1 %vm103_vm1, %v1934_v60 }
 0xe53   :  { %1919 = vmatmul.msk.bf16.vlgmr.msrb.gmra.mxu1 %vm1717_vm0, %v1704_v23 }
 0xeb0   :  { %v1630_v49 = vpop.f32.mrf.mxu1 }
 0xeb1   :  { %v1631_v63 = vadd.f32 %v1630_v49, %v1585_v28  ;;  %v1792_v28 = vld [vmem:[%s3307_s4] sm:$0xff]  ;;  %s2237_s4 = smov 110  }
 0xeb3   :  { %v1640_v17 = vmax.f32 %v1631_v63, 0.0 }
 0xeb8   :  { %v1632_v1 = vpop.f32.mrf.mxu1 }
 0xeb9   :  { %v1633_v36 = vadd.f32 %v1632_v1, %v1590_v12 }
 0xebb   :  { %v1641_v3 = vmax.f32 %v1633_v36, 0.0 }
 0xebd   :  { %v1644_v56 = vpack.c.bf16 %v1641_v3, %v1640_v17 }
 0xec0   :  { %v1635_v45 = vpop.f32.mrf.mxu1 }
 0xec1   :  { %v1636_v35 = vadd.f32 %v1635_v45, %v1595_v0 }
 0xec3   :  { %v1642_v32 = vmax.f32 %v1636_v35, 0.0 }
 0xec8   :  { %v1637_v10 = vpop.f32.mrf.mxu1 }
 0xec9   :  { %v1638_v5 = vadd.f32 %v1637_v10, %v1600_v54 }
 0xecb   :  { %v1643_v15 = vmax.f32 %v1638_v5, 0.0 }
 0xecd   :  { %v1645_v62 = vpack.c.bf16 %v1643_v15, %v1642_v32 }
 0xecf   :  { %1660 = vmatpush.bf16.msra.mxu2 %v1645_v62 }
 0xed0   :  { %v1734_v30 = vpop.f32.mrf.mxu1 }
 0xed1   :  { %v1735_v57 = vadd.f32 %v1948_v27, %v1734_v30  ;;  %v1801_v30 = vld [vmem:[%s3308_s3 + $0x8] sm:$0xff] }
 0xed3   :  { %1661 = vmatpush.bf16.msra.mxu2 %v1644_v56  ;;  %v1739_v6 = vmax.f32 %v1735_v57, 0.0 }
 0xed6   :  { %1914 = vmatmul.msk.bf16.vlgmr.msra.gmra.mxu2 %vm835_vm8, %v1880_v21 }
 0xed7   :  { %1770 = vmatpush.bf16.msrb.mxu2 %v1937_v40 }
 0xed8   :  { %v1736_v46 = vpop.f32.mrf.mxu1 }
 0xed9   :  { %v1737_v7 = vadd.f32 %v1948_v27, %v1736_v46 }
 0xedb   :  { %1771 = vmatpush.bf16.msrb.mxu2 %v1936_v20  ;;  %v1740_v26 = vmax.f32 %v1737_v7, 0.0 }
 0xedd   :  { %v1745_v14 = vpack.c.bf16 %v1740_v26, %v1739_v6 }
 0xee6   :  { %1928 = vmatmul.msk.bf16.vlgmr.msrb.gmra.mxu2 %vm835_vm8, %v1745_v14 }
 0xf59   :  { %v1663_v43 = vpop.f32.mrf.mxu2 }
 0xf5a   :  { %v1664_v48 = vadd.f32 %v1663_v43, %v1649_v52 }
 0xf5c   :  { %v1667_v2 = vadd.f32 %v1664_v48, %v1580_v19 }
 0xf5e   :  { %v1668_v44 = vrot.slane %v1667_v2, 4 }
 0xf60   :  { %v1669_v41 = vadd.f32 %v1668_v44, %v1667_v2 }
 0xf61   :  { %v1665_v8 = vpop.f32.mrf.mxu2 }
 0xf62   :  { %v1670_v47 = vrot.slane %v1669_v41, 2 }
 0xf64   :  { %v1671_v61 = vadd.f32 %v1670_v47, %v1669_v41 }
 0xf66   :  { %v1672_v13 = vrot.slane %v1671_v61, 1 }
 0xf68   :  { %v1673_v18 = vadd.f32 %v1672_v13, %v1671_v61 }
 0xf69   :  { %v1773_v25 = vpop.f32.mrf.mxu2 }
 0xf6a   :  { %v1674_v55 = vmul.f32 %v1673_v18, %v2760_v11  ;;  %v1774_v38 = vadd.f32 %v1773_v25, %v1759_v51 }
 0xf6c   :  { %v1675_v9 = vsub.f32 %v1667_v2, %v1674_v55  ;;  %v1778_v19 = vmax.f32 %v1774_v38, 0.0 }
 0xf6e   :  { %v1676_v59 = vmul.f32 %v1675_v9, %v1675_v9  ;;  %v1784_v22 = vmul.f32 %v1949_v37, %v1778_v19 }
 0xf70   :  { %v1677_v33 = vrot.slane %v1676_v59, 4  ;;  %v1786_v34 = vsel %vm1717_vm0, %v1784_v22, 0.0 }
 0xf71   :  { %v1775_v50 = vpop.f32.mrf.mxu2  ;;  %1787 = vadd.xlane.f32.xlu1 %v1786_v34 }
 0xf72   :  { %v1678_v53 = vadd.f32 %v1677_v33, %v1676_v59  ;;  %v1776_v4 = vadd.f32 %v1775_v50, %v1759_v51 }
 0xf74   :  { %v1679_v24 = vrot.slane %v1678_v53, 2  ;;  %v1779_v29 = vmax.f32 %v1776_v4, 0.0 }
 0xf76   :  { %v1680_v31 = vadd.f32 %v1679_v24, %v1678_v53  ;;  %v1785_v58 = vmul.f32 %v1949_v37, %v1779_v29 }
 0xf78   :  { %v1681_v60 = vrot.slane %v1680_v31, 1  ;;  %v1789_v16 = vsel %vm1717_vm0, %v1785_v58, 0.0 }
 0xf79   :  { %1790 = vadd.xlane.f32.xlu2 %v1789_v16 }
 0xf7a   :  { %v1682_v23 = vadd.f32 %v1681_v60, %v1680_v31 }
 0xf7c   :  { %v1683_v49 = vmul.f32 %v1682_v23, %v2760_v11 }
 0xf7e   :  { %v1684_v27 = vadd.f32 1e-05, %v1683_v49 }
 0xf80   :  { %2214 = vrsqrt.f32 %v1684_v27  ;;  %vm1691_vm2 = vweird.f32 %v1684_v27 }
 0xf86   :  { %v2215_v1 = vpop.eup %2214 }
 0xf87   :  { %v1686_v0 = vmul.f32 %v2215_v1, %v1684_v27  ;;  %vm1692_vm1 = vweird.f32 %v2215_v1 }
 0xf88   :  { %vm1693_vm3 = vmor %vm1691_vm2, %vm1692_vm1 }
 0xf89   :  { %v1687_v45 = vmul.f32 %v2215_v1, %v1686_v0 }
 0xf8b   :  { %v1688_v12 = vmul.f32 0.5, %v1687_v45 }
 0xf8d   :  { %v1689_v35 = vsub.f32 1.5, %v1688_v12 }
 0xf8f   :  { %v1690_v54 = vmul.f32 %v2215_v1, %v1689_v35 }
 0xf91   :  { %v1694_v10 = vsel %vm1693_vm3, %v2215_v1, %v1690_v54 }
 0xf92   :  { %v1695_v36 = vmul.f32 %v1694_v10, %v1675_v9 }
 0xf94   :  { %v1696_v5 = vmul.f32 %v1695_v36, %v3234_v42  ;;  %v1800_v42 = vld [vmem:[%s3308_s3] sm:$0xff] }
 0xf96   :  { %v1697_v11 = vadd.f32 %v1696_v5, %v3237_v39 }
 0xf98   :  { %v1793_v63 = vmul.f32 %v1792_v28, %v1697_v11 }
 0xf9a   :  { %v1794_v32 = vrot.slane %v1793_v63, 4 }
 0xf9c   :  { %v1795_v15 = vadd.f32 %v1794_v32, %v1793_v63 }
 0xf9e   :  { %v1796_v3 = vrot.slane %v1795_v15, 2 }
 0xfa0   :  { %v1797_v62 = vadd.f32 %v1796_v3, %v1795_v15 }
 0xfa2   :  { %v1798_v17 = vrot.slane %v1797_v62, 1 }
 0xfa4   :  { %v1799_v40 = vadd.f32 %v1798_v17, %v1797_v62 }
 0xfa6   :  { %v1803_v56 = vmul.f32 %v1801_v30, %v1799_v40  ;;  %v1802_v21 = vmul.f32 %v1800_v42, %v1799_v40 }
 0xfa8   :  { %1806 = vadd.xlane.f32.xlu1 %v1803_v56  ;;  %1804 = vadd.xlane.f32.xlu0 %v1802_v21 }
 0xfe4   :  { %v1788_v39 = vpop.xlane.xlu1 %1787 }
 0xfec   :  { %v1791_v20 = vpop.xlane.xlu2 %1790 }
0x101b   :  { %v1807_v46 = vpop.xlane.xlu1 %1806  ;;  %v1805_v57 = vpop.xlane.xlu0 %1804 }
0x101c   :  { %v1809_v7 = vadd.f32 %v1807_v46, %v1791_v20  ;;  %v1808_v6 = vadd.f32 %v1805_v57, %v1788_v39 }
0x101e   :  { %v1811_v26 = vadd.f32 %v1949_v37, %v1809_v7  ;;  %v1810_v14 = vadd.f32 %v1949_v37, %v1808_v6 }
0x1020   :  { %1814 = vrot.lane.b32.xlu2 %v1810_v14, %s2237_s4  ;;  %1816 = vrot.lane.b32.xlu0 %v1811_v26, %s2237_s4 }
0x107a   :  { %v1815_v52 = vpop.permute.xlu2 %1814 }
0x107b   :  { %1821 = vst.msk [vmem:[%s3309_s12] sm:$0xff] %vm1820_vm4, %v1815_v52 }
0x1092   :  { %v1817_v43 = vpop.permute.xlu0 %1816 }
0x1093   :  { %1822 = vst.msk [vmem:[%s3309_s12 + $0x8] sm:$0xff] %vm1820_vm4, %v1817_v43 }

</bundles_post_ra>
